<compile_context>
chip_gen: v6e
topology: v6e:2x2x1
jax: 0.10.0
libtpu: 0.0.40
codegen_flags: <defaults>
</compile_context>

<pallas_src>
import math
import functools

import jax
import jax.numpy as jnp
from jax import lax
from jax.experimental import pallas as pl
from jax.experimental.pallas import tpu as pltpu

LN_EPS = 1e-5  # nn.LayerNorm default eps


# ----------------------------------------------------------------------------- kernel
def encoder_kernel(x_ref, win_t_ref, bin_ref, wo_t_ref, bo_ref,
                   g1_ref, be1_ref, w1_t_ref, bf1_ref,
                   w2_t_ref, bf2_ref, g2_ref, be2_ref,
                   o_ref, state_ref, *, seq_len, true_d):
    """One grid step = (row tile i, encoder block b). The activations for row tile i
    live in `state_ref` (VMEM) across the whole block axis."""
    blk = pl.program_id(1)
    n_blk = pl.num_programs(1)

    # Load the input rows only once (first block); afterwards the state is resident.
    @pl.when(blk == 0)
    def _():
        state_ref[...] = x_ref[...].astype(jnp.float32)

    x = state_ref[...]                      # (R, Dp), R = bt * seq_len
    R, Dp = x.shape

    # ---- hoisted parameter loads for this encoder block (once per grid step) ----
    w_in = win_t_ref[0]                     # (Dp, 3*Dp)
    b_in = bin_ref[0]                       # (1, 3*Dp)
    w_o, b_o = wo_t_ref[0], bo_ref[0]       # (Dp, Dp), (1, Dp)
    g1, be1 = g1_ref[0], be1_ref[0]         # (1, Dp)
    w1, b1 = w1_t_ref[0], bf1_ref[0]        # (Dp, Hp), (1, Hp)
    w2, b2 = w2_t_ref[0], bf2_ref[0]        # (Hp, Dp), (1, Dp)
    g2, be2 = g2_ref[0], be2_ref[0]         # (1, Dp)

    # Lane mask over the true (unpadded) feature dim; padded lanes of x are zero and
    # padded weight rows/cols are zero, so only LayerNorm stats need explicit masking.
    lane = lax.broadcasted_iota(jnp.int32, (R, Dp), 1)
    dmask = lane < true_d
    inv_d = 1.0 / true_d

    def layer_norm(y, g, b):
        ym = jnp.where(dmask, y, 0.0)
        mu = jnp.sum(ym, axis=-1, keepdims=True) * inv_d
        dev = jnp.where(dmask, y - mu, 0.0)
        var = jnp.sum(dev * dev, axis=-1, keepdims=True) * inv_d
        return dev * lax.rsqrt(var + LN_EPS) * g + b

    # ---------------- self-attention (num_heads = 1) ----------------
    qkv = jnp.dot(x, w_in, preferred_element_type=jnp.float32) + b_in   # (R, 3Dp)
    scale = 1.0 / math.sqrt(true_d)          # head_dim == true D for num_heads == 1
    q = qkv[:, 0:Dp] * scale
    k = qkv[:, Dp:2 * Dp]
    v = qkv[:, 2 * Dp:3 * Dp]

    # One (R,R) matmul with a block-diagonal mask instead of Bt micro-matmuls.
    scores = lax.dot_general(q, k, (((1,), (1,)), ((), ())),
                             preferred_element_type=jnp.float32)        # (R, R)
    ridx = lax.broadcasted_iota(jnp.int32, (R, R), 0)
    cidx = lax.broadcasted_iota(jnp.int32, (R, R), 1)
    if (seq_len & (seq_len - 1)) == 0:
        # power-of-two seq_len: i//S == j//S  <=>  (i ^ j) < S  (no integer divide)
        same_seq = jnp.bitwise_xor(ridx, cidx) < seq_len
    else:
        inv_s = 1.0 / seq_len                # float floor-divide; +0.5 keeps it exact
        rb = jnp.floor((ridx.astype(jnp.float32) + 0.5) * inv_s)
        cb = jnp.floor((cidx.astype(jnp.float32) + 0.5) * inv_s)
        same_seq = rb == cb
    scores = jnp.where(same_seq, scores, -1e30)

    scores = scores - jnp.max(scores, axis=-1, keepdims=True)
    p = jnp.exp(scores)
    inv_den = pl.reciprocal(jnp.sum(p, axis=-1, keepdims=True), approx=True)
    p = p * inv_den
    attn = jnp.dot(p, v, preferred_element_type=jnp.float32)            # (R, Dp)

    attn_out = jnp.dot(attn, w_o, preferred_element_type=jnp.float32) + b_o

    # ---------------- residual + LayerNorm 1 (dropout p=0.0 -> identity) ----------------
    x = layer_norm(x + attn_out, g1, be1)

    # ---------------- feed-forward ----------------
    h = jnp.dot(x, w1, preferred_element_type=jnp.float32) + b1
    h = jnp.maximum(h, 0.0)                  # ReLU (Dropout p=0.0 is identity)
    ff = jnp.dot(h, w2, preferred_element_type=jnp.float32) + b2

    # ---------------- residual + LayerNorm 2 ----------------
    x = layer_norm(x + ff, g2, be2)

    state_ref[...] = x                       # stays resident for the next block

    @pl.when(blk == n_blk - 1)
    def _():
        o_ref[...] = x.astype(o_ref.dtype)   # written back to HBM once, after all blocks


# ----------------------------------------------------------------------------- wrapper
def _num_tensorcores():
    # v7x has 2 TensorCores per chip; v5e/v6e have 1.
    try:
        kind = jax.devices()[0].device_kind.lower()
    except Exception:
        return 1
    return 2 if "v7" in kind else 1


def _pick_batch_tile(B, S, num_tc=None):
    """Batch elements per grid step (rows per step = bt*S).

    Tiny problems: ONE grid step with the whole batch — never split the grid on
    single-TC v5e/v6e, and even on 2-TC v7x sharding ~us of work only duplicates
    weight DMAs and pipeline prologues.  Large batches: tile toward ~TARGET rows per
    step (v5e likes 128-256, v6e/v7x 256-512) keeping (bt*S) % 8 == 0, else fall back
    to the full batch (full-extent blocks are always legal)."""
    if num_tc is None:
        num_tc = _num_tensorcores()
    target = 256 if num_tc >= 2 else 512
    if B * S <= 2 * target:
        return B
    best = B
    for bt in range(B - 1, 0, -1):
        if B % bt == 0 and (bt * S) % 8 == 0 and bt * S >= target:
            best = bt
    return best


def _vmem_budget(R, Dp, Hp):
    """Derive the VMEM request from the actual tile sizes (not a blanket constant)."""
    f32 = 4
    io_tile = R * Dp * f32
    w_block = (Dp * 3 * Dp + Dp * Dp + Dp * Hp + Hp * Dp) * f32
    b_block = (3 * Dp + 7 * Dp + 2 * Hp) * f32
    need = 2 * 2 * io_tile               # in + out tiles, double-buffered
    need += 2 * (w_block + b_block)      # per-block weights, double-buffered
    need += io_tile                      # resident activation scratch
    need = 2 * need + (4 << 20)          # headroom for compiler-internal scratch
    return int(min(max(need, 8 << 20), 48 << 20))   # stays under v7x's 64 MiB physical


def _round_up(n, m):
    return ((n + m - 1) // m) * m


def _pad2(a, rows, cols):
    return jnp.pad(a, ((0, rows - a.shape[0]), (0, cols - a.shape[1])))


def pack_encoder_params(blocks, D, H):
    """Zero-pad every block's params to lane-aligned Dp/Hp and stack on a block axis."""
    Dp = _round_up(D, 128)
    Hp = _round_up(H, 128)

    def pad_win(w):                      # (D, 3D) -> (Dp, 3Dp): pad q/k/v chunks separately
        chunks = [_pad2(w[:, i * D:(i + 1) * D], Dp, Dp) for i in range(3)]
        return jnp.concatenate(chunks, axis=1)

    def pad_bin(b):                      # (3D,) -> (1, 3Dp)
        chunks = [jnp.pad(b[i * D:(i + 1) * D], (0, Dp - D)) for i in range(3)]
        return jnp.concatenate(chunks)[None, :]

    def pad_vec(v, P):                   # (n,) -> (1, P), zero padded
        return jnp.pad(v, (0, P - v.shape[0]))[None, :]

    packed = {
        "win_t": jnp.stack([pad_win(p["win_t"]) for p in blocks]),
        "bin":   jnp.stack([pad_bin(p["bin"]) for p in blocks]),
        "wo_t":  jnp.stack([_pad2(p["wo_t"], Dp, Dp) for p in blocks]),
        "bo":    jnp.stack([pad_vec(p["bo"], Dp) for p in blocks]),
        "g1":    jnp.stack([pad_vec(p["g1"], Dp) for p in blocks]),
        "be1":   jnp.stack([pad_vec(p["be1"], Dp) for p in blocks]),
        "w1_t":  jnp.stack([_pad2(p["w1_t"], Dp, Hp) for p in blocks]),
        "bf1":   jnp.stack([pad_vec(p["bf1"], Hp) for p in blocks]),
        "w2_t":  jnp.stack([_pad2(p["w2_t"], Hp, Dp) for p in blocks]),
        "bf2":   jnp.stack([pad_vec(p["bf2"], Dp) for p in blocks]),
        "g2":    jnp.stack([pad_vec(p["g2"], Dp) for p in blocks]),
        "be2":   jnp.stack([pad_vec(p["be2"], Dp) for p in blocks]),
    }
    return packed, Dp, Hp


def encoder_forward(x, blocks_params):
    """Run the whole Encoder (all EncoderBlocks) in ONE fused pallas_call."""
    B, S, D = x.shape
    NB = len(blocks_params)
    H = blocks_params[0]["w1_t"].shape[1]
    packed, Dp, Hp = pack_encoder_params(blocks_params, D, H)

    bt = _pick_batch_tile(B, S)
    R = bt * S
    n_tiles = B // bt
    grid = (n_tiles, NB)                       # row tiles (parallel) x blocks (arbitrary)

    # Wrapper-side layout plumbing: flatten rows and zero-pad the feature dim to 128
    # lanes so every in-kernel load/store and the HBM<->VMEM DMA are lane-dense.
    xp = jnp.pad(x.reshape(B * S, D), ((0, 0), (0, Dp - D)))

    def wspec(shape):
        nd = len(shape)
        return pl.BlockSpec((1,) + shape[1:], lambda i, b, _nd=nd: (b,) + (0,) * (_nd - 1))

    in_specs = [pl.BlockSpec((R, Dp), lambda i, b: (i, 0))] + [
        wspec(packed[name].shape) for name in
        ("win_t", "bin", "wo_t", "bo", "g1", "be1",
         "w1_t", "bf1", "w2_t", "bf2", "g2", "be2")]

    kernel = functools.partial(encoder_kernel, seq_len=S, true_d=D)

    out = pl.pallas_call(
        kernel,
        out_shape=jax.ShapeDtypeStruct((B * S, Dp), x.dtype),
        grid_spec=pltpu.PrefetchScalarGridSpec(
            num_scalar_prefetch=0,
            grid=grid,
            in_specs=in_specs,
            out_specs=pl.BlockSpec((R, Dp), lambda i, b: (i, 0)),
            scratch_shapes=[pltpu.VMEM((R, Dp), jnp.float32)],
        ),
        compiler_params=pltpu.CompilerParams(
            dimension_semantics=("parallel", "arbitrary"),
            vmem_limit_bytes=_vmem_budget(R, Dp, Hp),
        ),
    )(xp, packed["win_t"], packed["bin"], packed["wo_t"], packed["bo"],
      packed["g1"], packed["be1"], packed["w1_t"], packed["bf1"],
      packed["w2_t"], packed["bf2"], packed["g2"], packed["be2"])

    return out[:, :D].reshape(B, S, D)


# ----------------------------------------------------------------------------- params / reference
def init_block_params(key, D, H):
    ks = jax.random.split(key, 8)
    s = 0.05
    # Stored already transposed ("x @ W" orientation) — both kernel and reference use them.
    return {
        "win_t": jax.random.normal(ks[0], (D, 3 * D), jnp.float32) * s,
        "bin":   jax.random.normal(ks[1], (3 * D,), jnp.float32) * s,
        "wo_t":  jax.random.normal(ks[2], (D, D), jnp.float32) * s,
        "bo":    jax.random.normal(ks[3], (D,), jnp.float32) * s,
        "g1": jnp.ones((D,), jnp.float32), "be1": jnp.zeros((D,), jnp.float32),
        "w1_t": jax.random.normal(ks[4], (D, H), jnp.float32) * s,
        "bf1":  jax.random.normal(ks[5], (H,), jnp.float32) * s,
        "w2_t": jax.random.normal(ks[6], (H, D), jnp.float32) * s,
        "bf2":  jax.random.normal(ks[7], (D,), jnp.float32) * s,
        "g2": jnp.ones((D,), jnp.float32), "be2": jnp.zeros((D,), jnp.float32),
    }


def reference_block(x, p):
    # Pure-JAX reference for one EncoderBlock (float32, unpadded).
    D = x.shape[-1]
    qkv = x @ p["win_t"] + p["bin"]
    q, k, v = qkv[..., :D], qkv[..., D:2 * D], qkv[..., 2 * D:]
    scores = (q / math.sqrt(D)) @ jnp.swapaxes(k, -1, -2)
    attn = jax.nn.softmax(scores, axis=-1) @ v
    x = x + (attn @ p["wo_t"] + p["bo"])
    x = (x - x.mean(-1, keepdims=True)) * lax.rsqrt(x.var(-1, keepdims=True) + LN_EPS)
    x = x * p["g1"] + p["be1"]
    ff = jnp.maximum(x @ p["w1_t"] + p["bf1"], 0.0) @ p["w2_t"] + p["bf2"]
    x = x + ff
    x = (x - x.mean(-1, keepdims=True)) * lax.rsqrt(x.var(-1, keepdims=True) + LN_EPS)
    return x * p["g2"] + p["be2"]


# ----------------------------------------------------------------------------- main
if __name__ == "__main__":
    # Small shapes consistent with the module: (batch, seq, input_dim), single head.
    B, S, D, H = 4, 8, 32, 64
    num_blocks = 2   # exercise the fused multi-block path of Encoder

    key = jax.random.PRNGKey(0)
    kx, kp = jax.random.split(key)
    x = jax.random.normal(kx, (B, S, D), jnp.float32)

    blocks_params = [init_block_params(k, D, H)
                     for k in jax.random.split(kp, num_blocks)]

    out = encoder_forward(x, blocks_params)
    out = jax.block_until_ready(out)

    # Correctness check against pure-JAX reference.
    ref = x
    for p in blocks_params:
        ref = reference_block(ref, p)

    assert out.shape == (B, S, D)
    max_err = jnp.max(jnp.abs(out - ref))
    assert jnp.allclose(out, ref, rtol=1e-2, atol=1e-2), f"mismatch vs reference ({max_err})"

    print("KERNEL_OK")
</pallas_src>

<mosaic_0001>
module attributes {stable_mosaic.version = 11 : i64} {
  func.func @encoder_kernel(%arg0: i32, %arg1: i32, %arg2: memref<32x128xf32, #tpu.memory_space<vmem>>, %arg3: memref<1x128x384xf32, #tpu.memory_space<vmem>>, %arg4: memref<1x1x384xf32, #tpu.memory_space<vmem>>, %arg5: memref<1x128x128xf32, #tpu.memory_space<vmem>>, %arg6: memref<1x1x128xf32, #tpu.memory_space<vmem>>, %arg7: memref<1x1x128xf32, #tpu.memory_space<vmem>>, %arg8: memref<1x1x128xf32, #tpu.memory_space<vmem>>, %arg9: memref<1x128x128xf32, #tpu.memory_space<vmem>>, %arg10: memref<1x1x128xf32, #tpu.memory_space<vmem>>, %arg11: memref<1x128x128xf32, #tpu.memory_space<vmem>>, %arg12: memref<1x1x128xf32, #tpu.memory_space<vmem>>, %arg13: memref<1x1x128xf32, #tpu.memory_space<vmem>>, %arg14: memref<1x1x128xf32, #tpu.memory_space<vmem>>, %arg15: memref<32x128xf32, #tpu.memory_space<vmem>>, %arg16: memref<32x128xf32, #tpu.memory_space<vmem>>) attributes {dimension_semantics = [#tpu.dimension_semantics<parallel>, #tpu.dimension_semantics<arbitrary>], iteration_bounds = array<i64: 1, 2>, scalar_prefetch = 0 : i64, scratch_operands = 1 : i64, tpu.core_type = #tpu.core_type<tc>, window_params = [{transform_indices = @transform_0, window_bounds = array<i64: 32, 128>}, {transform_indices = @transform_1, window_bounds = array<i64: 1, 128, 384>}, {transform_indices = @transform_2, window_bounds = array<i64: 1, 1, 384>}, {transform_indices = @transform_3, window_bounds = array<i64: 1, 128, 128>}, {transform_indices = @transform_4, window_bounds = array<i64: 1, 1, 128>}, {transform_indices = @transform_5, window_bounds = array<i64: 1, 1, 128>}, {transform_indices = @transform_6, window_bounds = array<i64: 1, 1, 128>}, {transform_indices = @transform_7, window_bounds = array<i64: 1, 128, 128>}, {transform_indices = @transform_8, window_bounds = array<i64: 1, 1, 128>}, {transform_indices = @transform_9, window_bounds = array<i64: 1, 128, 128>}, {transform_indices = @transform_10, window_bounds = array<i64: 1, 1, 128>}, {transform_indices = @transform_11, window_bounds = array<i64: 1, 1, 128>}, {transform_indices = @transform_12, window_bounds = array<i64: 1, 1, 128>}, {transform_indices = @transform_13, window_bounds = array<i64: 32, 128>}]} {
    %c0_i32 = arith.constant 0 : i32
    %0 = arith.cmpi eq, %arg1, %c0_i32 : i32
    %1 = arith.extui %0 : i1 to i32
    %c0_i32_0 = arith.constant 0 : i32
    %2 = arith.cmpi ne, %1, %c0_i32_0 : i32
    scf.if %2 {
      %c0_65 = arith.constant 0 : index
      %c0_66 = arith.constant 0 : index
      %123 = vector.load %arg2[%c0_65, %c0_66] : memref<32x128xf32, #tpu.memory_space<vmem>>, vector<32x128xf32>
      %c0_67 = arith.constant 0 : index
      %c0_68 = arith.constant 0 : index
      %124 = vector.load %arg16[%c0_67, %c0_68] : memref<32x128xf32, #tpu.memory_space<vmem>>, vector<32x128xf32>
      tpu.vector_store %arg16[%c0_67, %c0_68], %123 {strides = array<i32>} : memref<32x128xf32, #tpu.memory_space<vmem>>, vector<32x128xf32>,
    } else {
    }
    %c0 = arith.constant 0 : index
    %c0_1 = arith.constant 0 : index
    %3 = vector.load %arg16[%c0, %c0_1] : memref<32x128xf32, #tpu.memory_space<vmem>>, vector<32x128xf32>
    %c0_2 = arith.constant 0 : index
    %c0_3 = arith.constant 0 : index
    %c0_4 = arith.constant 0 : index
    %4 = vector.load %arg3[%c0_2, %c0_3, %c0_4] : memref<1x128x384xf32, #tpu.memory_space<vmem>>, vector<1x128x384xf32>
    %5 = vector.shape_cast %4 : vector<1x128x384xf32> to vector<128x384xf32>
    %c0_5 = arith.constant 0 : index
    %c0_6 = arith.constant 0 : index
    %c0_7 = arith.constant 0 : index
    %6 = vector.load %arg4[%c0_5, %c0_6, %c0_7] : memref<1x1x384xf32, #tpu.memory_space<vmem>>, vector<1x1x384xf32>
    %7 = vector.shape_cast %6 : vector<1x1x384xf32> to vector<1x384xf32>
    %c0_8 = arith.constant 0 : index
    %c0_9 = arith.constant 0 : index
    %c0_10 = arith.constant 0 : index
    %8 = vector.load %arg5[%c0_8, %c0_9, %c0_10] : memref<1x128x128xf32, #tpu.memory_space<vmem>>, vector<1x128x128xf32>
    %9 = vector.shape_cast %8 : vector<1x128x128xf32> to vector<128x128xf32>
    %c0_11 = arith.constant 0 : index
    %c0_12 = arith.constant 0 : index
    %c0_13 = arith.constant 0 : index
    %10 = vector.load %arg6[%c0_11, %c0_12, %c0_13] : memref<1x1x128xf32, #tpu.memory_space<vmem>>, vector<1x1x128xf32>
    %11 = vector.shape_cast %10 : vector<1x1x128xf32> to vector<1x128xf32>
    %c0_14 = arith.constant 0 : index
    %c0_15 = arith.constant 0 : index
    %c0_16 = arith.constant 0 : index
    %12 = vector.load %arg7[%c0_14, %c0_15, %c0_16] : memref<1x1x128xf32, #tpu.memory_space<vmem>>, vector<1x1x128xf32>
    %13 = vector.shape_cast %12 : vector<1x1x128xf32> to vector<1x128xf32>
    %c0_17 = arith.constant 0 : index
    %c0_18 = arith.constant 0 : index
    %c0_19 = arith.constant 0 : index
    %14 = vector.load %arg8[%c0_17, %c0_18, %c0_19] : memref<1x1x128xf32, #tpu.memory_space<vmem>>, vector<1x1x128xf32>
    %15 = vector.shape_cast %14 : vector<1x1x128xf32> to vector<1x128xf32>
    %c0_20 = arith.constant 0 : index
    %c0_21 = arith.constant 0 : index
    %c0_22 = arith.constant 0 : index
    %16 = vector.load %arg9[%c0_20, %c0_21, %c0_22] : memref<1x128x128xf32, #tpu.memory_space<vmem>>, vector<1x128x128xf32>
    %17 = vector.shape_cast %16 : vector<1x128x128xf32> to vector<128x128xf32>
    %c0_23 = arith.constant 0 : index
    %c0_24 = arith.constant 0 : index
    %c0_25 = arith.constant 0 : index
    %18 = vector.load %arg10[%c0_23, %c0_24, %c0_25] : memref<1x1x128xf32, #tpu.memory_space<vmem>>, vector<1x1x128xf32>
    %19 = vector.shape_cast %18 : vector<1x1x128xf32> to vector<1x128xf32>
    %c0_26 = arith.constant 0 : index
    %c0_27 = arith.constant 0 : index
    %c0_28 = arith.constant 0 : index
    %20 = vector.load %arg11[%c0_26, %c0_27, %c0_28] : memref<1x128x128xf32, #tpu.memory_space<vmem>>, vector<1x128x128xf32>
    %21 = vector.shape_cast %20 : vector<1x128x128xf32> to vector<128x128xf32>
    %c0_29 = arith.constant 0 : index
    %c0_30 = arith.constant 0 : index
    %c0_31 = arith.constant 0 : index
    %22 = vector.load %arg12[%c0_29, %c0_30, %c0_31] : memref<1x1x128xf32, #tpu.memory_space<vmem>>, vector<1x1x128xf32>
    %23 = vector.shape_cast %22 : vector<1x1x128xf32> to vector<1x128xf32>
    %c0_32 = arith.constant 0 : index
    %c0_33 = arith.constant 0 : index
    %c0_34 = arith.constant 0 : index
    %24 = vector.load %arg13[%c0_32, %c0_33, %c0_34] : memref<1x1x128xf32, #tpu.memory_space<vmem>>, vector<1x1x128xf32>
    %25 = vector.shape_cast %24 : vector<1x1x128xf32> to vector<1x128xf32>
    %c0_35 = arith.constant 0 : index
    %c0_36 = arith.constant 0 : index
    %c0_37 = arith.constant 0 : index
    %26 = vector.load %arg14[%c0_35, %c0_36, %c0_37] : memref<1x1x128xf32, #tpu.memory_space<vmem>>, vector<1x1x128xf32>
    %27 = vector.shape_cast %26 : vector<1x1x128xf32> to vector<1x128xf32>
    %28 = tpu.iota {dimensions = array<i32: 1>} : vector<32x128xi32>
    %c32_i32 = arith.constant 32 : i32
    %29 = vector.broadcast %c32_i32 : i32 to vector<32x128xi32>
    %30 = arith.cmpi slt, %28, %29 : vector<32x128xi32>
    %cst = arith.constant dense<0.000000e+00> : vector<32x384xf32>
    %31 = tpu.matmul %3, %5, %cst {dimension_numbers = #tpu.dot_dimension_numbers<[1], [0], [0], [1], [0, 0, 1, 1], [], []>} : vector<32x128xf32>, vector<128x384xf32>, vector<32x384xf32> -> vector<32x384xf32>
    %32 = vector.broadcast %7 : vector<1x384xf32> to vector<32x384xf32>
    %33 = arith.addf %31, %32 : vector<32x384xf32>
    %34 = vector.extract_strided_slice %33 {offsets = [0, 0], sizes = [32, 128], strides = [1, 1]} : vector<32x384xf32> to vector<32x128xf32>
    %cst_38 = arith.constant 0.176776692 : f32
    %35 = vector.broadcast %cst_38 : f32 to vector<32x128xf32>
    %36 = arith.mulf %34, %35 : vector<32x128xf32>
    %37 = vector.extract_strided_slice %33 {offsets = [0, 128], sizes = [32, 128], strides = [1, 1]} : vector<32x384xf32> to vector<32x128xf32>
    %38 = vector.extract_strided_slice %33 {offsets = [0, 256], sizes = [32, 128], strides = [1, 1]} : vector<32x384xf32> to vector<32x128xf32>
    %cst_39 = arith.constant dense<0.000000e+00> : vector<32x32xf32>
    %39 = tpu.matmul %36, %37, %cst_39 {dimension_numbers = #tpu.dot_dimension_numbers<[1], [1], [0], [0], [0, 0, 1, 0], [], []>} : vector<32x128xf32>, vector<32x128xf32>, vector<32x32xf32> -> vector<32x32xf32>
    %40 = tpu.iota {dimensions = array<i32: 0>} : vector<32x32xi32>
    %41 = tpu.iota {dimensions = array<i32: 1>} : vector<32x32xi32>
    %42 = arith.xori %40, %41 : vector<32x32xi32>
    %c8_i32 = arith.constant 8 : i32
    %43 = vector.broadcast %c8_i32 : i32 to vector<32x32xi32>
    %44 = arith.cmpi slt, %42, %43 : vector<32x32xi32>
    %cst_40 = arith.constant -1.000000e+30 : f32
    %45 = vector.broadcast %cst_40 : f32 to vector<32x32xf32>
    %46 = arith.select %44, %39, %45 : vector<32x32xi1>, vector<32x32xf32>
    %cst_41 = arith.constant dense<0xFF800000> : vector<32xf32>
    %47 = vector.multi_reduction <maximumf>, %46, %cst_41 [1] : vector<32x32xf32> to vector<32xf32>
    %48 = vector.shape_cast %47 : vector<32xf32> to vector<32x1xf32>
    %49 = vector.broadcast %48 : vector<32x1xf32> to vector<32x32xf32>
    %50 = arith.subf %46, %49 : vector<32x32xf32>
    %51 = math.exp %50 : vector<32x32xf32>
    %cst_42 = arith.constant dense<0.000000e+00> : vector<32xf32>
    %52 = vector.multi_reduction <add>, %51, %cst_42 [1] : vector<32x32xf32> to vector<32xf32>
    %53 = vector.shape_cast %52 : vector<32xf32> to vector<32x1xf32>
    %54 = tpu.reciprocal %53 {approx = true} : vector<32x1xf32> -> vector<32x1xf32>
    %55 = vector.broadcast %54 : vector<32x1xf32> to vector<32x32xf32>
    %56 = arith.mulf %51, %55 : vector<32x32xf32>
    %cst_43 = arith.constant dense<0.000000e+00> : vector<32x128xf32>
    %57 = tpu.matmul %56, %38, %cst_43 {dimension_numbers = #tpu.dot_dimension_numbers<[1], [0], [0], [1], [0, 0, 1, 1], [], []>} : vector<32x32xf32>, vector<32x128xf32>, vector<32x128xf32> -> vector<32x128xf32>
    %cst_44 = arith.constant dense<0.000000e+00> : vector<32x128xf32>
    %58 = tpu.matmul %57, %9, %cst_44 {dimension_numbers = #tpu.dot_dimension_numbers<[1], [0], [0], [1], [0, 0, 1, 1], [], []>} : vector<32x128xf32>, vector<128x128xf32>, vector<32x128xf32> -> vector<32x128xf32>
    %59 = vector.broadcast %11 : vector<1x128xf32> to vector<32x128xf32>
    %60 = arith.addf %58, %59 : vector<32x128xf32>
    %61 = arith.addf %3, %60 : vector<32x128xf32>
    %cst_45 = arith.constant 0.000000e+00 : f32
    %62 = vector.broadcast %cst_45 : f32 to vector<32x128xf32>
    %63 = arith.select %30, %61, %62 : vector<32x128xi1>, vector<32x128xf32>
    %cst_46 = arith.constant dense<0.000000e+00> : vector<32xf32>
    %64 = vector.multi_reduction <add>, %63, %cst_46 [1] : vector<32x128xf32> to vector<32xf32>
    %65 = vector.shape_cast %64 : vector<32xf32> to vector<32x1xf32>
    %cst_47 = arith.constant 3.125000e-02 : f32
    %66 = vector.broadcast %cst_47 : f32 to vector<32x1xf32>
    %67 = arith.mulf %65, %66 : vector<32x1xf32>
    %68 = vector.broadcast %67 : vector<32x1xf32> to vector<32x128xf32>
    %69 = arith.subf %61, %68 : vector<32x128xf32>
    %cst_48 = arith.constant 0.000000e+00 : f32
    %70 = vector.broadcast %cst_48 : f32 to vector<32x128xf32>
    %71 = arith.select %30, %69, %70 : vector<32x128xi1>, vector<32x128xf32>
    %72 = arith.mulf %71, %71 : vector<32x128xf32>
    %cst_49 = arith.constant dense<0.000000e+00> : vector<32xf32>
    %73 = vector.multi_reduction <add>, %72, %cst_49 [1] : vector<32x128xf32> to vector<32xf32>
    %74 = vector.shape_cast %73 : vector<32xf32> to vector<32x1xf32>
    %cst_50 = arith.constant 3.125000e-02 : f32
    %75 = vector.broadcast %cst_50 : f32 to vector<32x1xf32>
    %76 = arith.mulf %74, %75 : vector<32x1xf32>
    %cst_51 = arith.constant 9.99999974E-6 : f32
    %77 = vector.broadcast %cst_51 : f32 to vector<32x1xf32>
    %78 = arith.addf %76, %77 : vector<32x1xf32>
    %79 = math.rsqrt %78 : vector<32x1xf32>
    %80 = vector.broadcast %79 : vector<32x1xf32> to vector<32x128xf32>
    %81 = arith.mulf %71, %80 : vector<32x128xf32>
    %82 = vector.broadcast %13 : vector<1x128xf32> to vector<32x128xf32>
    %83 = arith.mulf %81, %82 : vector<32x128xf32>
    %84 = vector.broadcast %15 : vector<1x128xf32> to vector<32x128xf32>
    %85 = arith.addf %83, %84 : vector<32x128xf32>
    %cst_52 = arith.constant dense<0.000000e+00> : vector<32x128xf32>
    %86 = tpu.matmul %85, %17, %cst_52 {dimension_numbers = #tpu.dot_dimension_numbers<[1], [0], [0], [1], [0, 0, 1, 1], [], []>} : vector<32x128xf32>, vector<128x128xf32>, vector<32x128xf32> -> vector<32x128xf32>
    %87 = vector.broadcast %19 : vector<1x128xf32> to vector<32x128xf32>
    %88 = arith.addf %86, %87 : vector<32x128xf32>
    %cst_53 = arith.constant 0.000000e+00 : f32
    %89 = vector.broadcast %cst_53 : f32 to vector<32x128xf32>
    %90 = arith.maximumf %88, %89 : vector<32x128xf32>
    %cst_54 = arith.constant dense<0.000000e+00> : vector<32x128xf32>
    %91 = tpu.matmul %90, %21, %cst_54 {dimension_numbers = #tpu.dot_dimension_numbers<[1], [0], [0], [1], [0, 0, 1, 1], [], []>} : vector<32x128xf32>, vector<128x128xf32>, vector<32x128xf32> -> vector<32x128xf32>
    %92 = vector.broadcast %23 : vector<1x128xf32> to vector<32x128xf32>
    %93 = arith.addf %91, %92 : vector<32x128xf32>
    %94 = arith.addf %85, %93 : vector<32x128xf32>
    %cst_55 = arith.constant 0.000000e+00 : f32
    %95 = vector.broadcast %cst_55 : f32 to vector<32x128xf32>
    %96 = arith.select %30, %94, %95 : vector<32x128xi1>, vector<32x128xf32>
    %cst_56 = arith.constant dense<0.000000e+00> : vector<32xf32>
    %97 = vector.multi_reduction <add>, %96, %cst_56 [1] : vector<32x128xf32> to vector<32xf32>
    %98 = vector.shape_cast %97 : vector<32xf32> to vector<32x1xf32>
    %cst_57 = arith.constant 3.125000e-02 : f32
    %99 = vector.broadcast %cst_57 : f32 to vector<32x1xf32>
    %100 = arith.mulf %98, %99 : vector<32x1xf32>
    %101 = vector.broadcast %100 : vector<32x1xf32> to vector<32x128xf32>
    %102 = arith.subf %94, %101 : vector<32x128xf32>
    %cst_58 = arith.constant 0.000000e+00 : f32
    %103 = vector.broadcast %cst_58 : f32 to vector<32x128xf32>
    %104 = arith.select %30, %102, %103 : vector<32x128xi1>, vector<32x128xf32>
    %105 = arith.mulf %104, %104 : vector<32x128xf32>
    %cst_59 = arith.constant dense<0.000000e+00> : vector<32xf32>
    %106 = vector.multi_reduction <add>, %105, %cst_59 [1] : vector<32x128xf32> to vector<32xf32>
    %107 = vector.shape_cast %106 : vector<32xf32> to vector<32x1xf32>
    %cst_60 = arith.constant 3.125000e-02 : f32
    %108 = vector.broadcast %cst_60 : f32 to vector<32x1xf32>
    %109 = arith.mulf %107, %108 : vector<32x1xf32>
    %cst_61 = arith.constant 9.99999974E-6 : f32
    %110 = vector.broadcast %cst_61 : f32 to vector<32x1xf32>
    %111 = arith.addf %109, %110 : vector<32x1xf32>
    %112 = math.rsqrt %111 : vector<32x1xf32>
    %113 = vector.broadcast %112 : vector<32x1xf32> to vector<32x128xf32>
    %114 = arith.mulf %104, %113 : vector<32x128xf32>
    %115 = vector.broadcast %25 : vector<1x128xf32> to vector<32x128xf32>
    %116 = arith.mulf %114, %115 : vector<32x128xf32>
    %117 = vector.broadcast %27 : vector<1x128xf32> to vector<32x128xf32>
    %118 = arith.addf %116, %117 : vector<32x128xf32>
    %c0_62 = arith.constant 0 : index
    %c0_63 = arith.constant 0 : index
    %119 = vector.load %arg16[%c0_62, %c0_63] : memref<32x128xf32, #tpu.memory_space<vmem>>, vector<32x128xf32>
    tpu.vector_store %arg16[%c0_62, %c0_63], %118 {strides = array<i32>} : memref<32x128xf32, #tpu.memory_space<vmem>>, vector<32x128xf32>,
    %c1_i32 = arith.constant 1 : i32
    %120 = arith.cmpi eq, %arg1, %c1_i32 : i32
    %121 = arith.extui %120 : i1 to i32
    %c0_i32_64 = arith.constant 0 : i32
    %122 = arith.cmpi ne, %121, %c0_i32_64 : i32
    scf.if %122 {
      %c0_65 = arith.constant 0 : index
      %c0_66 = arith.constant 0 : index
      %123 = vector.load %arg15[%c0_65, %c0_66] : memref<32x128xf32, #tpu.memory_space<vmem>>, vector<32x128xf32>
      tpu.vector_store %arg15[%c0_65, %c0_66], %118 {strides = array<i32>} : memref<32x128xf32, #tpu.memory_space<vmem>>, vector<32x128xf32>,
    } else {
    }
    return
  }
  func.func @transform_0(%arg0: i32, %arg1: i32) -> (i32, i32) {
    %c0_i32 = arith.constant 0 : i32
    %c0_i32_0 = arith.constant 0 : i32
    return %arg0, %c0_i32 : i32, i32
  }
  func.func @transform_1(%arg0: i32, %arg1: i32) -> (i32, i32, i32) {
    %c0_i32 = arith.constant 0 : i32
    %c0_i32_0 = arith.constant 0 : i32
    %c0_i32_1 = arith.constant 0 : i32
    return %arg1, %c0_i32, %c0_i32_0 : i32, i32, i32
  }
  func.func @transform_2(%arg0: i32, %arg1: i32) -> (i32, i32, i32) {
    %c0_i32 = arith.constant 0 : i32
    %c0_i32_0 = arith.constant 0 : i32
    %c0_i32_1 = arith.constant 0 : i32
    return %arg1, %c0_i32, %c0_i32_0 : i32, i32, i32
  }
  func.func @transform_3(%arg0: i32, %arg1: i32) -> (i32, i32, i32) {
    %c0_i32 = arith.constant 0 : i32
    %c0_i32_0 = arith.constant 0 : i32
    %c0_i32_1 = arith.constant 0 : i32
    return %arg1, %c0_i32, %c0_i32_0 : i32, i32, i32
  }
  func.func @transform_4(%arg0: i32, %arg1: i32) -> (i32, i32, i32) {
    %c0_i32 = arith.constant 0 : i32
    %c0_i32_0 = arith.constant 0 : i32
    %c0_i32_1 = arith.constant 0 : i32
    return %arg1, %c0_i32, %c0_i32_0 : i32, i32, i32
  }
  func.func @transform_5(%arg0: i32, %arg1: i32) -> (i32, i32, i32) {
    %c0_i32 = arith.constant 0 : i32
    %c0_i32_0 = arith.constant 0 : i32
    %c0_i32_1 = arith.constant 0 : i32
    return %arg1, %c0_i32, %c0_i32_0 : i32, i32, i32
  }
  func.func @transform_6(%arg0: i32, %arg1: i32) -> (i32, i32, i32) {
    %c0_i32 = arith.constant 0 : i32
    %c0_i32_0 = arith.constant 0 : i32
    %c0_i32_1 = arith.constant 0 : i32
    return %arg1, %c0_i32, %c0_i32_0 : i32, i32, i32
  }
  func.func @transform_7(%arg0: i32, %arg1: i32) -> (i32, i32, i32) {
    %c0_i32 = arith.constant 0 : i32
    %c0_i32_0 = arith.constant 0 : i32
    %c0_i32_1 = arith.constant 0 : i32
    return %arg1, %c0_i32, %c0_i32_0 : i32, i32, i32
  }
  func.func @transform_8(%arg0: i32, %arg1: i32) -> (i32, i32, i32) {
    %c0_i32 = arith.constant 0 : i32
    %c0_i32_0 = arith.constant 0 : i32
    %c0_i32_1 = arith.constant 0 : i32
    return %arg1, %c0_i32, %c0_i32_0 : i32, i32, i32
  }
  func.func @transform_9(%arg0: i32, %arg1: i32) -> (i32, i32, i32) {
    %c0_i32 = arith.constant 0 : i32
    %c0_i32_0 = arith.constant 0 : i32
    %c0_i32_1 = arith.constant 0 : i32
    return %arg1, %c0_i32, %c0_i32_0 : i32, i32, i32
  }
  func.func @transform_10(%arg0: i32, %arg1: i32) -> (i32, i32, i32) {
    %c0_i32 = arith.constant 0 : i32
    %c0_i32_0 = arith.constant 0 : i32
    %c0_i32_1 = arith.constant 0 : i32
    return %arg1, %c0_i32, %c0_i32_0 : i32, i32, i32
  }
  func.func @transform_11(%arg0: i32, %arg1: i32) -> (i32, i32, i32) {
    %c0_i32 = arith.constant 0 : i32
    %c0_i32_0 = arith.constant 0 : i32
    %c0_i32_1 = arith.constant 0 : i32
    return %arg1, %c0_i32, %c0_i32_0 : i32, i32, i32
  }
  func.func @transform_12(%arg0: i32, %arg1: i32) -> (i32, i32, i32) {
    %c0_i32 = arith.constant 0 : i32
    %c0_i32_0 = arith.constant 0 : i32
    %c0_i32_1 = arith.constant 0 : i32
    return %arg1, %c0_i32, %c0_i32_0 : i32, i32, i32
  }
  func.func @transform_13(%arg0: i32, %arg1: i32) -> (i32, i32) {
    %c0_i32 = arith.constant 0 : i32
    %c0_i32_0 = arith.constant 0 : i32
    return %arg0, %c0_i32 : i32, i32
  }
}

</mosaic_0001>

<bundles_post_ra>
// kernel: tpu_custom_call.1
= control target key start
LH: loop header
LB: loop body
LE: loop exit
PB: predicated region body
PF: predicated region fallthrough
CT: control target
= control target key end

     0   :  { %s3300_s0 = inlined_call_operand.hbm [shape: f32[32,128], index: 0, kind: input, shape index: {}]   ;;  %s3301_s1 = inlined_call_operand.hbm [shape: f32[2,128,384], index: 1, kind: input, shape index: {}]   ;;  %s3302_s2 = inlined_call_operand.hbm [shape: f32[2,1,384], index: 2, kind: input, shape index: {}]   ;;  %s3303_s3 = inlined_call_operand.hbm [shape: f32[2,128,128], index: 3, kind: input, shape index: {}]   ;;  %s3304_s4 = inlined_call_operand.vmem [shape: f32[2,1,128], index: 4, kind: input, shape index: {}]   ;;  %s3305_s5 = inlined_call_operand.vmem [shape: f32[2,1,128], index: 5, kind: input, shape index: {}]   ;;  %s3306_s6 = inlined_call_operand.vmem [shape: f32[2,1,128], index: 6, kind: input, shape index: {}]   ;;  %s3307_s7 = inlined_call_operand.hbm [shape: f32[2,128,128], index: 7, kind: input, shape index: {}]   ;;  %s3308_s8 = inlined_call_operand.vmem [shape: f32[2,1,128], index: 8, kind: input, shape index: {}]   ;;  %s3309_s9 = inlined_call_operand.hbm [shape: f32[2,128,128], index: 9, kind: input, shape index: {}]   ;;  %s3310_s10 = inlined_call_operand.vmem [shape: f32[2,1,128], index: 10, kind: input, shape index: {}]   ;;  %s3311_s11 = inlined_call_operand.vmem [shape: f32[2,1,128], index: 11, kind: input, shape index: {}]   ;;  %s3312_s12 = inlined_call_operand.vmem [shape: f32[2,1,128], index: 12, kind: input, shape index: {}]   ;;  %s3313_s13 = inlined_call_operand.hbm [shape: f32[32,128], index: 13, kind: output, shape index: {}]  }
   0x1   :  { %3325 = sst [smem:[#allocation26_spill]] %s3300_s0 }
   0x2   :  { %3326 = sst [smem:[#allocation27_spill]] %s3301_s1 }
   0x3   :  { %3327 = sst [smem:[#allocation28_spill]] %s3302_s2 }
   0x4   :  { %3328 = sst [smem:[#allocation29_spill]] %s3303_s3 }
   0x5   :  { %3329 = sst [smem:[#allocation30_spill]] %s3306_s6 }
   0x6   :  { %3330 = sst [smem:[#allocation31_spill]] %s3307_s7 }
   0x7   :  { %3331 = sst [smem:[#allocation32_spill]] %s3308_s8 }
   0x8   :  { %3332 = sst [smem:[#allocation33_spill]] %s3309_s9 }
   0x9   :  { %3333 = sst [smem:[#allocation34_spill]] %s3310_s10 }
   0xa   :  { %3334 = sst [smem:[#allocation35_spill]] %s3311_s11 }
   0xb   :  { %3335 = sst [smem:[#allocation36_spill]] %s3312_s12 }
   0xc   :  { %3336 = sst [smem:[#allocation37_spill]] %s3313_s13 }
   0xd   :  { %18 = vsyncpa [#allocation4], 0 }
   0xe   :  { %19 = vsyncpa [#allocation7], 0 }
   0xf   :  { %21 = vsyncpa [#allocation7 + $0x1], 0 }
  0x10   :  { %22 = vsyncpa [#allocation10], 0 }
  0x11   :  { %24 = vsyncpa [#allocation10 + $0x1], 0 }
  0x12   :  { %25 = vsyncpa [#allocation13], 0 }
  0x13   :  { %27 = vsyncpa [#allocation13 + $0x1], 0 }
  0x14   :  { %28 = vsyncpa [#allocation5], 0  ;;  %s2773_s25 = smov 0   ;;  %s2775_s26 = smov 0  }
  0x15   :  { %s2777_s27 = smov 0   ;;  %s2779_s28 = smov 0  }
  0x16   :  { %s2781_s29 = smov 0   ;;  %s2783_s30 = smov 0  }
  0x17 LB: > { %3337 = sst [smem:[#allocation20_spill]] %s2671_s26  ;;  %s43_s14 = sadd.s32 1, %s2683_s29  ;;  %s2687_s30 = sphi %s2783_s30, %s34_s30   ;;  %s2683_s29 = sphi %s2781_s29, %s3376_s29   ;;  %s2679_s28 = sphi %s2779_s28, %s3375_s28   ;;  %s2675_s27 = sphi %s2777_s27, %s3374_s27   ;;  %s2671_s26 = sphi %s2775_s26, %s3373_s26   ;;  %s2667_s25 = sphi %s2773_s25, %s3372_s25  }
  0x18   : > { %3338 = sst [smem:[#allocation21_spill]] %s2675_s27  ;;  %s79_s15 = sadd.s32 1, %s2675_s27 }
  0x19   : > { %3339 = sst [smem:[#allocation22_spill]] %s2683_s29  ;;  %p44_p0 = scmp.ge.s32.totalorder %s43_s14, 2 }
  0x1a   : > { %3340 = sst [smem:[#allocation23_spill]] %s2687_s30  ;;  %p86_p1 = scmp.ne.s32.totalorder %s2675_s27, %s2671_s26 }
  0x1b   : > { %p87_p2 = scmp.eq.s32.totalorder %s2687_s30, 0  ;;  %s3378_s14 = smov (%p44_p0, %s43_s14), 0 }
  0x1c   : > { %3341 = sst [smem:[#allocation24_spill]] %s3378_s14  ;;  %p2338_p4 = scmp.lt.s32.totalorder %s2687_s30, 2 }
  0x1d   : > { %p88_p3 = por %p87_p2, %p86_p1  ;;  %s76_s16 = ssub.s32 %s2683_s29, %s3378_s14 }
  0x1e   : > { %s3315_s17 = sand.u32 1, %s2687_s30   ;;  %p77_p5 = scmp.eq.s32.totalorder %s76_s16, 0 }
  0x1f   : > { %s2815_s18 = sand.u32 1, %s2675_s27   ;;  %s2294_s19 = smul.u32 6144, %s2683_s29 }
  0x20   : > { %s2819_s20 = scalar_select %p77_p5, %s2675_s27, %s79_s15  }
  0x21   : > { %s2293_s21 = smul.u32 384, %s2815_s18  ;;  %s3343_s1 = sld [smem:[#allocation27_spill]] }
  0x22   : > { %3342 = sst [smem:[#allocation25_spill]] %s2819_s20  ;;  %p2825_p6 = pnand %p2338_p4, %p88_p3 }
  0x23   : > { %s448_s12 = scalar_lea.vmem [#allocation6], %s2293_s21  ;;  %s2831_s16 = scalar_lea.sflag [#allocation7], %s3315_s17 }
  0x24   : > { %s455_s14 = sshll.u32 %s448_s12, 4  ;;  %p2835_p7 = pneg %p2825_p6  ;;  %s456_s14 = int_to_ptr.vmem [resolvable:$true] %s455_s14 }
  0x25   : > { %s2444_s20 = scalar_lea.vmem %s456_s14, 6144 }
  0x26   : > { %p2445_p8 = scmp.ne.s32.totalorder %s456_s14, %s2444_s20 }
  0x27   : > { %s454_s24 = scalar_lea.hbm %s3343_s1, %s2294_s19  ;;  %s2689_s19 = smov [#allocation6]  }
  0x28   : > { %p2447_p9 = pnand %p2445_p8, %p2835_p7  ;;  %s2449_s22 = sshll.u32 %s2689_s19, 4  ;;  %s2450_s22 = int_to_ptr.vmem [resolvable:$false] %s2449_s22 }
  0x29   : > { %s2451_s21 = scalar_lea.vmem %s2450_s22, 12288  ;;  %p2452_p11 = scmp.lt.s32.totalorder %s456_s14, %s2450_s22 }
  0x2a   : > { %p2448_p10 = pneg %p2447_p9  ;;  %p2453_p12 = scmp.lt.s32.totalorder %s2451_s21, %s2444_s20 }
  0x2c   : > { %p2454_p13 = por %p2453_p12, %p2452_p11 }
  0x2e   : > { %p2455_p0 = pnand %p2454_p13, %p2448_p10 }
  0x30   : > { %2458 = shalt.err (!%p2455_p0)
}
  0x31   : > { %s2690_s12 = smov 384   ;;  %s2691_s23 = smov 24  }
  0x32   : > { %2324 = dma.hbm_to_vmem [thread:$0]  (!%p2825_p6), %s454_s24, 6144, %s456_s14, %s2831_s16, %s2690_s12, %s2690_s12, %s2691_s23  }
  0x33   : > { %s2845_s17 = sshll.u32 %s2815_s18, 7  ;;  %s2848_s19 = sshll.u32 %s2683_s29, 11 }
  0x34   : > { %s3346_s3 = sld [smem:[#allocation29_spill]]  ;;  %s488_s1 = scalar_lea.vmem [#allocation9], %s2845_s17 }
  0x35   : > { %s495_s27 = sshll.u32 %s488_s1, 4  ;;  %s3347_s11 = sand.u32 1, %s2687_s30   ;;  %s496_s27 = int_to_ptr.vmem [resolvable:$true] %s495_s27 }
  0x36   : > { %s2857_s10 = scalar_lea.sflag [#allocation10], %s3347_s11  ;;  %s2472_s8 = scalar_lea.vmem %s496_s27, 2048 }
  0x37   : > { %p2473_p1 = scmp.ne.s32.totalorder %s496_s27, %s2472_s8  ;;  %s2692_s14 = smov [#allocation9]  }
  0x38   : > { %s2477_s24 = sshll.u32 %s2692_s14, 4  ;;  %s2478_s24 = int_to_ptr.vmem [resolvable:$false] %s2477_s24 }
  0x39   : > { %p2475_p2 = pnand %p2473_p1, %p2835_p7  ;;  %s2479_s12 = scalar_lea.vmem %s2478_s24, 4096 }
  0x3a   : > { %s494_s21 = scalar_lea.hbm %s3346_s3, %s2848_s19  ;;  %p2480_p4 = scmp.lt.s32.totalorder %s496_s27, %s2478_s24 }
  0x3b   : > { %p2476_p3 = pneg %p2475_p2  ;;  %p2481_p5 = scmp.lt.s32.totalorder %s2479_s12, %s2472_s8 }
  0x3d   : > { %p2482_p8 = por %p2481_p5, %p2480_p4 }
  0x3f   : > { %p2483_p9 = pnand %p2482_p8, %p2476_p3 }
  0x41   : > { %2486 = shalt.err (!%p2483_p9)
}
  0x42   : > { %s3317_s23 = smov 128   ;;  %s3319_s1 = smov 8  }
  0x43   : > { %2330 = dma.hbm_to_vmem [thread:$0]  (!%p2825_p6), %s494_s21, 2048, %s496_s27, %s2857_s10, %s3317_s23, %s3317_s23, %s3319_s1  }
  0x44   : > { %s2868_s8 = sadd.s32 4294967295, %s2687_s30   ;;  %p92_p10 = scmp.ne.s32.totalorder %s2671_s26, %s2667_s25 }
  0x45   : > { %p3323_p11 = scmp.eq.s32.totalorder %s2868_s8, 0  ;;  %p1978_p12 = scmp.ge.s32.totalorder %s2687_s30, 1 }
  0x46   : > { %p415_p13 = scmp.lt.s32.totalorder %s2687_s30, 3  ;;  %s2695_s27 = smov [#allocation3]  }
  0x47   : > { %p2877_p0 = por %p3323_p11, %p92_p10  ;;  %s430_s22 = sshll.u32 %s2695_s27, 4  ;;  %s431_s22 = int_to_ptr.vmem [resolvable:$true] %s430_s22 }
  0x48   : > { %p2881_p1 = pnand %p1978_p12, %p415_p13  ;;  %s2295_s21 = smul.u32 3, %s2815_s18 }
  0x49   : > { %s2296_s25 = smul.u32 48, %s2683_s29  ;;  %s3351_s2 = sld [smem:[#allocation28_spill]] }
  0x4a   : > { %p2317_p2 = pneg %p2881_p1  ;;  %s469_s1 = scalar_lea.vmem [#allocation8], %s2295_s21 }
  0x4b   : > { %s477_s3 = sshll.u32 %s469_s1, 4  ;;  %s3352_s7 = sld [smem:[#allocation31_spill]]  ;;  %s478_s3 = int_to_ptr.vmem [resolvable:$true] %s477_s3 }
  0x4c   : > { %p2891_p3 = pnand %p2317_p2, %p3323_p11  ;;  %s2498_s29 = scalar_lea.vmem %s431_s22, 512 }
  0x4d   : > { %p2499_p5 = scmp.ne.s32.totalorder %s431_s22, %s2498_s29  ;;  %p2506_p10 = scmp.lt.s32.totalorder %s431_s22, %s431_s22 }
  0x4e   : > { %p2489_p4 = pneg %p2891_p3  ;;  %p2507_p12 = scmp.lt.s32.totalorder %s2498_s29, %s2498_s29 }
  0x4f   : > { %s2898_s23 = scalar_lea.hbm %s3351_s2, %s2296_s25 }
  0x50   : > { %p2501_p8 = pnand %p2499_p5, %p2489_p4  ;;  %p2508_p13 = por %p2507_p12, %p2506_p10 }
  0x51   : > { %s533_s6 = scalar_lea.hbm %s3352_s7, %s2848_s19 }
  0x52   : > { %p2502_p9 = pneg %p2501_p8 }
  0x54   : > { %p2509_p2 = pnand %p2508_p13, %p2502_p9 }
  0x56   : > { %2512 = shalt.err (!%p2509_p2)
}
  0x57   : > { %s3353_s21 = smov 8   ;;  %s3354_s1 = smov 128  }
  0x58   : > { %s3355_s0 = sld [smem:[#allocation26_spill]]  ;;  %s2526_s24 = scalar_lea.vmem %s478_s3, 48 }
  0x59   : > { %p2527_p11 = scmp.ne.s32.totalorder %s478_s3, %s2526_s24  ;;  %s2696_s12 = smov [#allocation8]  }
  0x5a   : > { %s2531_s29 = sshll.u32 %s2696_s12, 4  ;;  %s2532_s29 = int_to_ptr.vmem [resolvable:$false] %s2531_s29 }
  0x5b   : > { %p2529_p4 = pnand %p2527_p11, %p2835_p7  ;;  %s2533_s27 = scalar_lea.vmem %s2532_s29, 96 }
  0x5c   : > { %p2534_p8 = scmp.lt.s32.totalorder %s478_s3, %s2532_s29  ;;  %p2535_p9 = scmp.lt.s32.totalorder %s2533_s27, %s2526_s24 }
  0x5d   : > { %p2530_p5 = pneg %p2529_p4 }
  0x5e   : > { %2320 = dma.hbm_to_vmem [thread:$0]  (!%p2891_p3), %s3355_s0, 512, %s431_s22, [#allocation4], %s3354_s1, %s3354_s1, %s3353_s21  }
  0x5f   : > { %p2536_p10 = por %p2535_p9, %p2534_p8 }
  0x61   : > { %p2537_p12 = pnand %p2536_p10, %p2530_p5 }
  0x63   : > { %2540 = shalt.err (!%p2537_p12)
}
  0x64   : > { %2327 = dma.hbm_to_vmem [thread:$0]  (!%p2825_p6), %s2898_s23, 48, %s478_s3, %s2831_s16  }
  0x65   : > { %s527_s22 = scalar_lea.vmem [#allocation11], %s2845_s17  ;;  %s2697_s30 = smov [#allocation11]  }
  0x66   : > { %s534_s14 = sshll.u32 %s527_s22, 4  ;;  %s2559_s24 = sshll.u32 %s2697_s30, 4  ;;  %s535_s14 = int_to_ptr.vmem [resolvable:$true] %s534_s14  ;;  %s2560_s24 = int_to_ptr.vmem [resolvable:$false] %s2559_s24 }
  0x67   : > { %s2554_s25 = scalar_lea.vmem %s535_s14, 2048  ;;  %s2561_s12 = scalar_lea.vmem %s2560_s24, 4096 }
  0x68   : > { %p2555_p11 = scmp.ne.s32.totalorder %s535_s14, %s2554_s25  ;;  %p2562_p2 = scmp.lt.s32.totalorder %s535_s14, %s2560_s24 }
  0x69   : > { %p2563_p4 = scmp.lt.s32.totalorder %s2561_s12, %s2554_s25 }
  0x6a   : > { %p2557_p3 = pnand %p2555_p11, %p2835_p7 }
  0x6b   : > { %p2564_p5 = por %p2563_p4, %p2562_p2 }
  0x6c   : > { %p2558_p13 = pneg %p2557_p3 }
  0x6e   : > { %p2565_p8 = pnand %p2564_p5, %p2558_p13 }
  0x70   : > { %2568 = shalt.err (!%p2565_p8)
}
  0x71   : > { %2333 = dma.hbm_to_vmem [thread:$0]  (!%p2825_p6), %s533_s6, 2048, %s535_s14, %s2857_s10, %s3354_s1, %s3354_s1, %s3353_s21  }
  0x72   : > { %s3356_s9 = sld [smem:[#allocation33_spill]]  ;;  %s554_s22 = scalar_lea.vmem [#allocation12], %s2845_s17 }
  0x73   : > { %s561_s25 = sshll.u32 %s554_s22, 4  ;;  %s551_s30 = scalar_lea.sflag [#allocation13], %s2815_s18  ;;  %s562_s25 = int_to_ptr.vmem [resolvable:$true] %s561_s25 }
  0x74   : > { %s2582_s24 = scalar_lea.vmem %s562_s25, 2048  ;;  %s2698_s12 = smov [#allocation12]  }
  0x75   : > { %p2583_p9 = scmp.ne.s32.totalorder %s562_s25, %s2582_s24  ;;  %s2587_s3 = sshll.u32 %s2698_s12, 4  ;;  %s2588_s3 = int_to_ptr.vmem [resolvable:$false] %s2587_s3 }
  0x76   : > { %s2589_s16 = scalar_lea.vmem %s2588_s3, 4096  ;;  %p2590_p11 = scmp.lt.s32.totalorder %s562_s25, %s2588_s3 }
  0x77   : > { %p2585_p10 = pnand %p2583_p9, %p2835_p7  ;;  %p2591_p3 = scmp.lt.s32.totalorder %s2589_s16, %s2582_s24 }
  0x78   : > { %s560_s27 = scalar_lea.hbm %s3356_s9, %s2848_s19 }
  0x79   : > { %p2586_p12 = pneg %p2585_p10  ;;  %p2592_p13 = por %p2591_p3, %p2590_p11 }
  0x7b   : > { %p2593_p2 = pnand %p2592_p13, %p2586_p12 }
  0x7d   : > { %2596 = shalt.err (!%p2593_p2)
}
  0x7e   : > { %2336 = dma.hbm_to_vmem [thread:$0]  (!%p2825_p6), %s560_s27, 2048, %s562_s25, %s551_s30, %s3354_s1, %s3354_s1, %s3353_s21  }
  0x7f   : > { %591 = sbr.rel (%p2881_p1) target bundleno = 2370 (0x942), region = 72  ;;  %p3357_p7 = scmp.eq.s32.totalorder (!%p2881_p1), %s2868_s8, 0 }
  0x84   : > { %2646 = dma.done.wait (%p3357_p7), [#allocation4], 512   ;;  %p3358_p4 = pmov %p3357_p7 }
  0x85   : > { %s597_s6 = sand.u32 1, %s2868_s8   ;;  %s599_s10 = sand.u32 1, %s2671_s26  }
  0x86   : > { %2648 = vsyncadd (%p3358_p4), [#allocation4], 4294966784  ;;  %s2297_s17 = smul.u32 384, %s599_s10  ;;  %s598_s13 = scalar_lea.sflag [#allocation7], %s597_s6 }
  0x88   : > { %s2955_s18 = scalar_lea.vmem [#allocation6], %s2297_s17 }
  0x89   : > { %2650 = dma.done.wait (%p2877_p0), %s598_s13, 6192  }
  0x8a   : > { %2652 = vsyncadd (%p2877_p0), %s598_s13, 4294961104  ;;  %s2298_s15 = smul.u32 3, %s599_s10  ;;  %s1994_s19 = sshll.u32 %s599_s10, 7 }
  0x8b   : > { %s616_s21 = scalar_lea.sflag [#allocation10], %s597_s6  ;;  %s2963_s1 = scalar_lea.vmem [#allocation9], %s1994_s19 }
  0x8c   : > { %s2961_s20 = scalar_lea.vmem [#allocation8], %s2298_s15 }
  0x8d   : > { %2654 = dma.done.wait (%p2877_p0), %s616_s21, 4096  }
  0x8e   : > { %2656 = vsyncadd (%p2877_p0), %s616_s21, 4294963200  ;;  %s2969_s14 = scalar_lea.vmem [#allocation11], %s1994_s19  ;;  %s634_s23 = scalar_lea.sflag [#allocation13], %s599_s10 }
  0x8f   : > { %s2971_s29 = scalar_lea.vmem [#allocation12], %s1994_s19 }
  0x90   : > { %2658 = dma.done.wait (%p2877_p0), %s634_s23, 2048  }
  0x91   : > { %2660 = vsyncadd (%p2877_p0), %s634_s23, 4294965248  ;;  %p717_p6 = scmp.lt.s32.totalorder %s2679_s28, 1  ;;  %s3359_s6 = sld [smem:[#allocation30_spill]] }
  0x92   : > { %s3360_s15 = sld [smem:[#allocation32_spill]]  ;;  %p1997_p0 = scmp.ne.s32.totalorder %s2679_s28, 0 }
  0x93   : > { %s2979_s27 = scalar_select %p717_p6, %s2679_s28, 1 }
  0x94   : > { %s3361_s22 = sld [smem:[#allocation34_spill]] }
  0x95   : > { %s722_s11 = scalar_lea.vmem %s3305_s5, %s2979_s27  ;;  %s3362_s7 = sld [smem:[#allocation35_spill]] }
  0x96   : > { %s3363_s24 = sld [smem:[#allocation36_spill]] }
  0x97   : > { %s725_s10 = scalar_lea.vmem %s3359_s6, %s2979_s27 }
  0x98   : > { %s728_s19 = scalar_lea.vmem %s3360_s15, %s2979_s27  ;;  %742 = sbr.rel (%p1997_p0) target bundleno = 160 (0xa0), region = 100 }
  0x9a   : > { %s731_s25 = scalar_lea.vmem %s3361_s22, %s2979_s27 }
  0x9b   : > { %s734_s30 = scalar_lea.vmem %s3362_s7, %s2979_s27 }
  0x9c   : > { %s737_s12 = scalar_lea.vmem %s3363_s24, %s2979_s27 }
  0x9d   : > { %v743_v0 = vld [vmem:[#allocation3] sm:$0xff]  ;;  %v744_v1 = vld [vmem:[#allocation3 + $0x8] sm:$0xff]  ;;  %v745_v2 = vld [vmem:[#allocation3 + $0x10] sm:$0xff] }
  0x9e   : > { %747 = vst [vmem:[#allocation2 + $0x10] sm:$0xff] %v743_v0  ;;  %748 = vst [vmem:[#allocation2] sm:$0xff] %v744_v1  ;;  %v746_v3 = vld [vmem:[#allocation3 + $0x18] sm:$0xff] }
  0x9f   : > { %749 = vst [vmem:[#allocation2 + $0x18] sm:$0xff] %v745_v2  ;;  %750 = vst [vmem:[#allocation2 + $0x8] sm:$0xff] %v746_v3 }
  0xa0 PF: > { %v801_v4 = vld [vmem:[%s2955_s18 + $0x170] sm:$0xff]  ;;  %v800_v5 = vld [vmem:[%s2955_s18 + $0x168] sm:$0xff]  ;;  %v798_v6 = vld [vmem:[%s2955_s18 + $0x158] sm:$0xff]  ;;  %v2699_v8 = vmov 0.0   ;;  %v859_v41 = vlaneseq  ;;  %vm1158_vm2 = vcmask 261120   ;;  %s3364_s7 = scalar_lea.vmem %s3304_s4, %s2979_s27  ;;  %p2009_p1 = scmp.ne.s32.totalorder %s2679_s28, 1 }
  0xa1   : > { %878 = vmatprep.subr.mxu0 %v801_v4  ;;  %v797_v7 = vld [vmem:[%s2955_s18 + $0x150] sm:$0xff]  ;;  %942 = vmatprep.mubr.f32.mxu0 %v2699_v8  ;;  %v795_v9 = vld [vmem:[%s2955_s18 + $0x140] sm:$0xff]  ;;  %v794_v10 = vld [vmem:[%s2955_s18 + $0x138] sm:$0xff] }
  0xa2   : > { %879 = vmatpush1.msra.mxu0 %v800_v5  ;;  %v792_v11 = vld [vmem:[%s2955_s18 + $0x128] sm:$0xff]  ;;  %v791_v12 = vld [vmem:[%s2955_s18 + $0x120] sm:$0xff]  ;;  %v789_v13 = vld [vmem:[%s2955_s18 + $0x110] sm:$0xff]  ;;  %v3060_v42 = vshrl.u32 %v859_v41, 7 }
  0xa3   : > { %880 = vmatprep.subr.mxu0 %v798_v6  ;;  %v788_v14 = vld [vmem:[%s2955_s18 + $0x108] sm:$0xff]  ;;  %v786_v15 = vld [vmem:[%s2955_s18 + $0xf8] sm:$0xff]  ;;  %v785_v16 = vld [vmem:[%s2955_s18 + $0xf0] sm:$0xff] }
  0xa4   : > { %881 = vmatpush1.msra.mxu0 %v797_v7  ;;  %v783_v17 = vld [vmem:[%s2955_s18 + $0xe0] sm:$0xff]  ;;  %v782_v19 = vld [vmem:[%s2955_s18 + $0xd8] sm:$0xff]  ;;  %v780_v20 = vld [vmem:[%s2955_s18 + $0xc8] sm:$0xff]  ;;  %v865_v43 = vsub.s32 0, %v3060_v42  ;;  %v869_v53 = vsub.s32 1, %v3060_v42 }
  0xa5   : > { %882 = vmatprep.subr.mxu0 %v795_v9  ;;  %v3024_v18 = vld [vmem:[#allocation2 + $0x10] sm:$0xff]  ;;  %v779_v21 = vld [vmem:[%s2955_s18 + $0xc0] sm:$0xff]  ;;  %v776_v23 = vld [vmem:[%s2955_s18 + $0xa8] sm:$0xff] }
  0xa6   : > { %883 = vmatpush1.msra.mxu0 %v794_v10  ;;  %2145 = vmatprep.mubr.f32.mxu1 %v3024_v18  ;;  %v777_v22 = vld [vmem:[%s2955_s18 + $0xb0] sm:$0xff]  ;;  %v774_v24 = vld [vmem:[%s2955_s18 + $0x98] sm:$0xff]  ;;  %v771_v26 = vld [vmem:[%s2955_s18 + $0x80] sm:$0xff] }
  0xa7   : > { %884 = vmatprep.subr.mxu0 %v792_v11  ;;  %v773_v25 = vld [vmem:[%s2955_s18 + $0x90] sm:$0xff]  ;;  %v770_v27 = vld [vmem:[%s2955_s18 + $0x78] sm:$0xff]  ;;  %v768_v28 = vld [vmem:[%s2955_s18 + $0x68] sm:$0xff] }
  0xa8   : > { %885 = vmatpush1.msra.mxu0 %v791_v12  ;;  %v767_v29 = vld [vmem:[%s2955_s18 + $0x60] sm:$0xff]  ;;  %v765_v30 = vld [vmem:[%s2955_s18 + $0x50] sm:$0xff]  ;;  %v764_v31 = vld [vmem:[%s2955_s18 + $0x48] sm:$0xff] }
  0xa9   : > { %886 = vmatprep.subr.mxu0 %v789_v13  ;;  %v762_v32 = vld [vmem:[%s2955_s18 + $0x38] sm:$0xff]  ;;  %v761_v33 = vld [vmem:[%s2955_s18 + $0x30] sm:$0xff]  ;;  %v759_v34 = vld [vmem:[%s2955_s18 + $0x20] sm:$0xff] }
  0xaa   : > { %887 = vmatpush1.msra.mxu0 %v788_v14  ;;  %v758_v35 = vld [vmem:[%s2955_s18 + $0x18] sm:$0xff]  ;;  %v756_v36 = vld [vmem:[%s2955_s18 + $0x8] sm:$0xff]  ;;  %v755_v37 = vld [vmem:[%s2955_s18] sm:$0xff] }
  0xab   : > { %888 = vmatprep.subr.mxu0 %v786_v15  ;;  %v3048_v38 = vld [vmem:[#allocation2] sm:$0xff]  ;;  %v3052_v39 = vld [vmem:[#allocation2 + $0x18] sm:$0xff]  ;;  %v3056_v40 = vld [vmem:[#allocation2 + $0x8] sm:$0xff] }
  0xac   : > { %889 = vmatpush1.msra.mxu0 %v785_v16  ;;  %v3064_v44 = vld [vmem:[%s2961_s20] sm:$0x7]  ;;  %v802_v4 = vld [vmem:[%s2955_s18 + $0x178] sm:$0xff]  ;;  %v796_v6 = vld [vmem:[%s2955_s18 + $0x148] sm:$0xff] }
  0xad   : > { %890 = vmatprep.subr.mxu0 %v783_v17  ;;  %v866_v45 = vrot.slane %v3064_v44, %v865_v43  ;;  %v870_v56 = vrot.slane %v3064_v44, %v869_v53  ;;  %v799_v5 = vld [vmem:[%s2955_s18 + $0x160] sm:$0xff]  ;;  %2113 = vmatprep.subr.mxu1 %v802_v4  ;;  %v793_v7 = vld [vmem:[%s2955_s18 + $0x130] sm:$0xff]  ;;  %v784_v10 = vld [vmem:[%s2955_s18 + $0xe8] sm:$0xff] }
  0xae   : > { %891 = vmatpush1.msra.mxu0 %v782_v19  ;;  %2114 = vmatpush3.msra.mxu1 %v802_v4  ;;  %v787_v9 = vld [vmem:[%s2955_s18 + $0x100] sm:$0xff]  ;;  %v781_v11 = vld [vmem:[%s2955_s18 + $0xd0] sm:$0xff]  ;;  %v778_v12 = vld [vmem:[%s2955_s18 + $0xb8] sm:$0xff] }
  0xaf   : > { %892 = vmatprep.subr.mxu0 %v780_v20  ;;  %2115 = vmatprep.subr.mxu1 %v799_v5  ;;  %v775_v13 = vld [vmem:[%s2955_s18 + $0xa0] sm:$0xff]  ;;  %v772_v14 = vld [vmem:[%s2955_s18 + $0x88] sm:$0xff]  ;;  %v769_v15 = vld [vmem:[%s2955_s18 + $0x70] sm:$0xff] }
  0xb0   : > { %893 = vmatpush1.msra.mxu0 %v779_v21  ;;  %2116 = vmatpush3.msra.mxu1 %v799_v5  ;;  %v766_v16 = vld [vmem:[%s2955_s18 + $0x58] sm:$0xff]  ;;  %v763_v17 = vld [vmem:[%s2955_s18 + $0x40] sm:$0xff]  ;;  %v760_v19 = vld [vmem:[%s2955_s18 + $0x28] sm:$0xff]  ;;  %v3089_v21 = vand.u32 127, %v859_v41 }
  0xb1   : > { %894 = vmatprep.subr.mxu0 %v777_v22  ;;  %2117 = vmatprep.subr.mxu1 %v796_v6  ;;  %v757_v20 = vld [vmem:[%s2955_s18 + $0x10] sm:$0xff]  ;;  %v1143_v22 = vadd.s32 8, %v3060_v42 }
  0xb2   : > { %895 = vmatpush1.msra.mxu0 %v776_v23  ;;  %2118 = vmatpush3.msra.mxu1 %v796_v6  ;;  %v1146_v23 = vxor.u32 %v3060_v42, %v3089_v21  ;;  %vm861_vm5 = vcmp.lt.s32.totalorder %v3089_v21, 32 }
  0xb3   : > { %896 = vmatprep.subr.mxu0 %v774_v24  ;;  %2119 = vmatprep.subr.mxu1 %v793_v7  ;;  %v1144_v24 = vadd.s32 16, %v3060_v42 }
  0xb4   : > { %897 = vmatpush1.msra.mxu0 %v773_v25  ;;  %2120 = vmatpush3.msra.mxu1 %v793_v7  ;;  %v1147_v25 = vxor.u32 %v1143_v22, %v3089_v21  ;;  %vm1150_vm0 = vcmp.lt.s32.totalorder %v1146_v23, 8  ;;  %v809_v22 = vld [vmem:[%s2963_s1 + $0x28] sm:$0xff]  ;;  %v808_v23 = vld [vmem:[%s2963_s1 + $0x20] sm:$0xff] }
  0xb5   : > { %898 = vmatprep.subr.mxu0 %v771_v26  ;;  %v1145_v26 = vadd.s32 24, %v3060_v42 }
  0xb6   : > { %899 = vmatpush1.msra.mxu0 %v770_v27  ;;  %vm1151_vm1 = vcmp.lt.s32.totalorder %v1147_v25, 8  ;;  %v806_v25 = vld [vmem:[%s2963_s1 + $0x10] sm:$0xff] }
  0xb7   : > { %900 = vmatprep.subr.mxu0 %v768_v28  ;;  %v1148_v28 = vxor.u32 %v1144_v24, %v3089_v21  ;;  %v807_v24 = vld [vmem:[%s2963_s1 + $0x18] sm:$0xff] }
  0xb8   : > { %901 = vmatpush1.msra.mxu0 %v767_v29 }
  0xb9   : > { %902 = vmatprep.subr.mxu0 %v765_v30  ;;  %v1149_v30 = vxor.u32 %v1145_v26, %v3089_v21  ;;  %vm1152_vm3 = vcmp.lt.s32.totalorder %v1148_v28, 8 }
  0xba   : > { %903 = vmatpush1.msra.mxu0 %v764_v31 }
  0xbb   : > { %904 = vmatprep.subr.mxu0 %v762_v32  ;;  %vm1153_vm4 = vcmp.lt.s32.totalorder %v1149_v30, 8 }
  0xbc   : > { %905 = vmatpush1.msra.mxu0 %v761_v33 }
  0xbd   : > { %906 = vmatprep.subr.mxu0 %v759_v34 }
  0xbe   : > { %907 = vmatpush1.msra.mxu0 %v758_v35 }
  0xbf   : > { %908 = vmatprep.subr.mxu0 %v756_v36 }
  0xc0   : > { %909 = vmatpush1.msra.mxu0 %v755_v37 }
  0xc1   : > { %943 = vmatmul.mubr.f32.vlgmr.msra.gmra.mxu0 %v3024_v18 }
  0xc2   : > { %948 = vmatprep.mubr.f32.mxu0 %v2699_v8 }
  0xc5   : > { %949 = vmatmul.mubr.f32.gmra.mxu0 %v3048_v38 }
  0xc6   : > { %954 = vmatprep.mubr.f32.mxu0 %v2699_v8 }
  0xc9   : > { %955 = vmatmul.mubr.f32.gmra.mxu0 %v3052_v39 }
  0xca   : > { %960 = vmatprep.mubr.f32.mxu0 %v2699_v8  ;;  %v790_v8 = vld [vmem:[%s2955_s18 + $0x118] sm:$0xff] }
  0xcb   : > { %2121 = vmatprep.subr.mxu1 %v790_v8 }
  0xcc   : > { %2122 = vmatpush3.msra.mxu1 %v790_v8 }
  0xcd   : > { %961 = vmatmul.mubr.f32.gmra.mxu0 %v3056_v40  ;;  %2123 = vmatprep.subr.mxu1 %v787_v9 }
  0xce   : > { %2124 = vmatpush3.msra.mxu1 %v787_v9 }
  0xcf   : > { %2125 = vmatprep.subr.mxu1 %v784_v10 }
  0xd0   : > { %2126 = vmatpush3.msra.mxu1 %v784_v10  ;;  %v819_v10 = vld [vmem:[%s2963_s1 + $0x78] sm:$0xff] }
  0xd1   : > { %2127 = vmatprep.subr.mxu1 %v781_v11 }
  0xd2   : > { %2128 = vmatpush3.msra.mxu1 %v781_v11  ;;  %v818_v11 = vld [vmem:[%s2963_s1 + $0x70] sm:$0xff] }
  0xd3   : > { %2129 = vmatprep.subr.mxu1 %v778_v12 }
  0xd4   : > { %2130 = vmatpush3.msra.mxu1 %v778_v12  ;;  %v817_v12 = vld [vmem:[%s2963_s1 + $0x68] sm:$0xff] }
  0xd5   : > { %2131 = vmatprep.subr.mxu1 %v775_v13 }
  0xd6   : > { %2132 = vmatpush3.msra.mxu1 %v775_v13  ;;  %v816_v13 = vld [vmem:[%s2963_s1 + $0x60] sm:$0xff] }
  0xd7   : > { %2133 = vmatprep.subr.mxu1 %v772_v14 }
  0xd8   : > { %2134 = vmatpush3.msra.mxu1 %v772_v14  ;;  %v815_v14 = vld [vmem:[%s2963_s1 + $0x58] sm:$0xff] }
  0xd9   : > { %2135 = vmatprep.subr.mxu1 %v769_v15 }
  0xda   : > { %2136 = vmatpush3.msra.mxu1 %v769_v15  ;;  %v814_v15 = vld [vmem:[%s2963_s1 + $0x50] sm:$0xff] }
  0xdb   : > { %2137 = vmatprep.subr.mxu1 %v766_v16 }
  0xdc   : > { %2138 = vmatpush3.msra.mxu1 %v766_v16  ;;  %v813_v16 = vld [vmem:[%s2963_s1 + $0x48] sm:$0xff] }
  0xdd   : > { %2139 = vmatprep.subr.mxu1 %v763_v17 }
  0xde   : > { %2140 = vmatpush3.msra.mxu1 %v763_v17  ;;  %v812_v17 = vld [vmem:[%s2963_s1 + $0x40] sm:$0xff] }
  0xdf   : > { %2141 = vmatprep.subr.mxu1 %v760_v19 }
  0xe0   : > { %2142 = vmatpush3.msra.mxu1 %v760_v19  ;;  %v811_v19 = vld [vmem:[%s2963_s1 + $0x38] sm:$0xff] }
  0xe1   : > { %2143 = vmatprep.subr.mxu1 %v757_v20 }
  0xe2   : > { %2144 = vmatpush3.msra.mxu1 %v757_v20  ;;  %v810_v20 = vld [vmem:[%s2963_s1 + $0x30] sm:$0xff] }
  0xe3   : > { %2146 = vmatmul.mubr.f32.vlgmr.msra.gmra.mxu1 %v3048_v38  ;;  %2179 = vmatprep.subr.mxu1 %v819_v10 }
  0xe4   : > { %2148 = vmatprep.mubr.f32.mxu1 %v3052_v39  ;;  %2180 = vmatpush3.msra.mxu1 %v819_v10 }
  0xe5   : > { %2181 = vmatprep.subr.mxu1 %v818_v11 }
  0xe6   : > { %2182 = vmatpush3.msra.mxu1 %v818_v11 }
  0xe7   : > { %2149 = vmatmul.mubr.f32.gmra.mxu1 %v3056_v40  ;;  %2183 = vmatprep.subr.mxu1 %v817_v12 }
  0xe8   : > { %2184 = vmatpush3.msra.mxu1 %v817_v12 }
  0xe9   : > { %2185 = vmatprep.subr.mxu1 %v816_v13 }
  0xea   : > { %2186 = vmatpush3.msra.mxu1 %v816_v13 }
  0xeb   : > { %2187 = vmatprep.subr.mxu1 %v815_v14 }
  0xec   : > { %2188 = vmatpush3.msra.mxu1 %v815_v14 }
  0xed   : > { %2189 = vmatprep.subr.mxu1 %v814_v15 }
  0xee   : > { %2190 = vmatpush3.msra.mxu1 %v814_v15 }
  0xef   : > { %2191 = vmatprep.subr.mxu1 %v813_v16 }
  0xf0   : > { %2192 = vmatpush3.msra.mxu1 %v813_v16 }
  0xf1   : > { %2193 = vmatprep.subr.mxu1 %v812_v17 }
  0xf2   : > { %2194 = vmatpush3.msra.mxu1 %v812_v17 }
  0xf3   : > { %2195 = vmatprep.subr.mxu1 %v811_v19 }
  0xf4   : > { %2196 = vmatpush3.msra.mxu1 %v811_v19 }
  0xf5   : > { %2197 = vmatprep.subr.mxu1 %v810_v20 }
  0xf6   : > { %2198 = vmatpush3.msra.mxu1 %v810_v20  ;;  %v835_v20 = vld [vmem:[%s2969_s14 + $0x60] sm:$0xff] }
  0xf7   : > { %2199 = vmatprep.subr.mxu1 %v809_v22 }
  0xf8   : > { %2200 = vmatpush3.msra.mxu1 %v809_v22  ;;  %v834_v22 = vld [vmem:[%s2969_s14 + $0x58] sm:$0xff] }
  0xf9   : > { %2201 = vmatprep.subr.mxu1 %v808_v23 }
  0xfa   : > { %2202 = vmatpush3.msra.mxu1 %v808_v23  ;;  %v833_v23 = vld [vmem:[%s2969_s14 + $0x50] sm:$0xff] }
  0xfb   : > { %2203 = vmatprep.subr.mxu1 %v807_v24 }
  0xfc   : > { %2204 = vmatpush3.msra.mxu1 %v807_v24  ;;  %v832_v24 = vld [vmem:[%s2969_s14 + $0x48] sm:$0xff] }
  0xfd   : > { %2205 = vmatprep.subr.mxu1 %v806_v25 }
  0xfe   : > { %2206 = vmatpush3.msra.mxu1 %v806_v25  ;;  %v831_v25 = vld [vmem:[%s2969_s14 + $0x40] sm:$0xff] }
 0x181   : > { %v944_v46 = vpop.f32.mrf.mxu0 }
 0x182   : > { %v945_v47 = vadd.f32 %v944_v46, %v866_v45  ;;  %v873_v46 = vsub.s32 2, %v3060_v42 }
 0x183   : > { %v946_v48 = vpop.f32.mrf.mxu0 }
 0x184   : > { %v1052_v49 = vmul.f32 0.17677669, %v945_v47  ;;  %v947_v61 = vadd.f32 %v946_v48, %v870_v56  ;;  %v874_v48 = vrot.slane %v3064_v44, %v873_v46 }
 0x185   : > { %v950_v50 = vpop.f32.mrf.mxu0 }
 0x186   : > { %2159 = vmatprep.mubr.f32.mxu0 %v1052_v49  ;;  %v951_v62 = vadd.f32 %v950_v50, %v866_v45 }
 0x187   : > { %v952_v51 = vpop.f32.mrf.mxu0 }
 0x188   : > { %v953_v60 = vadd.f32 %v952_v51, %v870_v56  ;;  %v1053_v0 = vmul.f32 0.17677669, %v951_v62 }
 0x189   : > { %v956_v52 = vpop.f32.mrf.mxu0 }
 0x18a   : > { %v957_v63 = vadd.f32 %v956_v52, %v866_v45 }
 0x18b   : > { %v958_v54 = vpop.f32.mrf.mxu0 }
 0x18c   : > { %v959_v59 = vadd.f32 %v958_v54, %v870_v56  ;;  %v1054_v2 = vmul.f32 0.17677669, %v957_v63 }
 0x18d   : > { %v962_v55 = vpop.f32.mrf.mxu0 }
 0x18e   : > { %v963_v1 = vadd.f32 %v962_v55, %v866_v45 }
 0x18f   : > { %v964_v57 = vpop.f32.mrf.mxu0 }
 0x190   : > { %v965_v58 = vadd.f32 %v964_v57, %v870_v56  ;;  %v1055_v3 = vmul.f32 0.17677669, %v963_v1 }
 0x192   : > { %2151 = vmatprep.subr.mxu0 %v965_v58 }
 0x193   : > { %2152 = vmatpush3.xpose.msra.mxu0 %v965_v58 }
 0x194   : > { %2153 = vmatprep.subr.mxu0 %v959_v59 }
 0x197   : > { %2154 = vmatpush3.xpose.msra.mxu0 %v959_v59 }
 0x198   : > { %2155 = vmatprep.subr.mxu0 %v953_v60 }
 0x19b   : > { %2156 = vmatpush3.xpose.msra.mxu0 %v953_v60 }
 0x19c   : > { %2157 = vmatprep.subr.mxu0 %v947_v61 }
 0x19f   : > { %2158 = vmatpush3.xpose.msra.mxu0 %v947_v61 }
 0x1a2   : > { %2160 = vmatmul.mubr.f32.vlgmr.msra.gmra.mxu0 %v1053_v0 }
 0x1a3   : > { %2162 = vmatprep.mubr.f32.mxu0 %v1054_v2  ;;  %v2147_v47 = vpop.f32.mrf.mxu1 }
 0x1a4   : > { %v1039_v7 = vadd.f32 %v2147_v47, %v874_v48 }
 0x1a5   : > { %v1033_v49 = vpop.f32.mrf.mxu1 }
 0x1a6   : > { %2163 = vmatmul.mubr.f32.gmra.mxu0 %v1055_v3  ;;  %v1034_v9 = vadd.f32 %v1033_v49, %v874_v48  ;;  %v2002_v49 = vld [vmem:[%s3364_s7] ss:$0 sm:$0xff] }
 0x1a7   : > { %v2150_v50 = vpop.f32.mrf.mxu1 }
 0x1a8   : > { %v1049_v51 = vadd.f32 %v2150_v50, %v874_v48 }
 0x1a9   : > { %v1043_v6 = vpop.f32.mrf.mxu1 }
 0x1aa   : > { %2165 = vmatprep.subr.mxu0 %v1049_v51  ;;  %v1044_v8 = vadd.f32 %v1043_v6, %v874_v48 }
 0x1ab   : > { %2166 = vmatpush3.msra.mxu0 %v1049_v51 }
 0x1ac   : > { %2167 = vmatprep.subr.mxu0 %v1044_v8 }
 0x1ad   : > { %2168 = vmatpush3.msra.mxu0 %v1044_v8 }
 0x1ae   : > { %2169 = vmatprep.subr.mxu0 %v1039_v7 }
 0x1af   : > { %2170 = vmatpush3.msra.mxu0 %v1039_v7 }
 0x1b0   : > { %2171 = vmatprep.subr.mxu0 %v1034_v9 }
 0x1b1   : > { %2172 = vmatpush3.msra.mxu0 %v1034_v9 }
 0x262   : > { %v2161_v27 = vpop.f32.mrf.mxu0 }
 0x263   : > { %v1155_v34 = vsel %vm1151_vm1, %v2161_v27, -1e+30 }
 0x264   : > { %v1122_v29 = vpop.f32.mrf.mxu0  ;;  %v1162_v37 = vsel %vm1158_vm2, %v1155_v34, -inf }
 0x265   : > { %v1154_v31 = vsel %vm1150_vm0, %v1122_v29, -1e+30 }
 0x266   : > { %v2164_v32 = vpop.f32.mrf.mxu0  ;;  %v1159_v33 = vsel %vm1158_vm2, %v1154_v31, -inf }
 0x267   : > { %1160 = vmax.xlane.f32.xlu0 %v1159_v33  ;;  %v1157_v43 = vsel %vm1153_vm4, %v2164_v32, -1e+30 }
 0x268   : > { %v1132_v35 = vpop.f32.mrf.mxu0  ;;  %v1168_v45 = vsel %vm1158_vm2, %v1157_v43, -inf }
 0x269   : > { %v1156_v36 = vsel %vm1152_vm3, %v1132_v35, -1e+30 }
 0x26a   : > { %v1165_v41 = vsel %vm1158_vm2, %v1156_v36, -inf }
 0x26b   : > { %1163 = vmax.xlane.f32.xlu0 %v1162_v37  ;;  %1166 = vmax.xlane.f32.xlu1 %v1165_v41  ;;  %v805_v41 = vld [vmem:[%s2963_s1 + $0x8] sm:$0xff] }
 0x26c   : > { %2207 = vmatprep.subr.mxu1 %v805_v41 }
 0x26d   : > { %2208 = vmatpush3.msra.mxu1 %v805_v41  ;;  %v851_v41 = vld [vmem:[%s2971_s29 + $0x58] sm:$0xff] }
 0x26f   : > { %1169 = vmax.xlane.f32.xlu1 %v1168_v45 }
 0x2f0   : > { %v1161_v52 = vpop.xlane.xlu0 %1160 }
 0x2f1   : > { %v1171_v53 = vsub.f32 %v1154_v31, %v1161_v52 }
 0x2f3   : > { %v1175_v54 = vmul.f32 1.442695, %v1171_v53 }
 0x2f4   : > { %v1164_v55 = vpop.xlane.xlu0 %1163  ;;  %v1167_v56 = vpop.xlane.xlu1 %1166 }
 0x2f5   : > { %2399 = vpow2.f32 %v1175_v54  ;;  %v1172_v57 = vsub.f32 %v1155_v34, %v1164_v55  ;;  %v1173_v58 = vsub.f32 %v1156_v36, %v1167_v56 }
 0x2f7   : > { %v1177_v59 = vmul.f32 1.442695, %v1172_v57  ;;  %v1179_v60 = vmul.f32 1.442695, %v1173_v58 }
 0x2f8   : > { %v1170_v61 = vpop.xlane.xlu1 %1169 }
 0x2f9   : > { %2401 = vpow2.f32 %v1177_v59  ;;  %v1174_v42 = vsub.f32 %v1157_v43, %v1170_v61  ;;  %v804_v43 = vld [vmem:[%s2963_s1] sm:$0xff] }
 0x2fa   : > { %2403 = vpow2.f32 %v1179_v60  ;;  %2209 = vmatprep.subr.mxu1 %v804_v43 }
 0x2fb   : > { %v1181_v44 = vmul.f32 1.442695, %v1174_v42  ;;  %2210 = vmatpush3.msra.mxu1 %v804_v43  ;;  %v850_v43 = vld [vmem:[%s2971_s29 + $0x50] sm:$0xff] }
 0x2fd   : > { %2405 = vpow2.f32 %v1181_v44 }
 0x302   : > { %v3105_v62 = vpop.eup %2399 }
 0x303   : > { %v1183_v63 = vsel %vm1158_vm2, %v3105_v62, 0.0 }
 0x304   : > { %1184 = vadd.xlane.f32.xlu0 %v1183_v63  ;;  %v837_v63 = vld [vmem:[%s2969_s14 + $0x70] sm:$0xff] }
 0x306   : > { %v3109_v0 = vpop.eup %2401 }
 0x307   : > { %v3111_v1 = vpop.eup %2403  ;;  %v1186_v2 = vsel %vm1158_vm2, %v3109_v0, 0.0 }
 0x308   : > { %1187 = vadd.xlane.f32.xlu1 %v1186_v2  ;;  %v1189_v3 = vsel %vm1158_vm2, %v3111_v1, 0.0 }
 0x309   : > { %1190 = vadd.xlane.f32.xlu0 %v1189_v3 }
 0x30a   : > { %v3117_v4 = vpop.eup %2405 }
 0x30b   : > { %v1192_v5 = vsel %vm1158_vm2, %v3117_v4, 0.0 }
 0x30c   : > { %1193 = vadd.xlane.f32.xlu1 %v1192_v5 }
 0x38d   : > { %v1185_v26 = vpop.xlane.xlu0 %1184 }
 0x38e   : > { %2407 = vrcp.f32 %v1185_v26  ;;  %v830_v26 = vld [vmem:[%s2969_s14 + $0x38] sm:$0xff] }
 0x391   : > { %v1188_v27 = vpop.xlane.xlu1 %1187 }
 0x392   : > { %v1191_v28 = vpop.xlane.xlu0 %1190  ;;  %2409 = vrcp.f32 %v1188_v27  ;;  %v829_v27 = vld [vmem:[%s2969_s14 + $0x30] sm:$0xff] }
 0x393   : > { %2411 = vrcp.f32 %v1191_v28  ;;  %v828_v28 = vld [vmem:[%s2969_s14 + $0x28] sm:$0xff] }
 0x395   : > { %v1194_v29 = vpop.xlane.xlu1 %1193 }
 0x396   : > { %2413 = vrcp.f32 %v1194_v29  ;;  %v827_v29 = vld [vmem:[%s2969_s14 + $0x20] sm:$0xff] }
 0x39b   : > { %v2408_v30 = vpop.eup %2407 }
 0x39c   : > { %v1199_v31 = vmul.f32 %v2408_v30, %v3105_v62  ;;  %v826_v30 = vld [vmem:[%s2969_s14 + $0x18] sm:$0xff] }
 0x39e   : > { %2173 = vmatprep.mubr.msk.f32.mxu0 %vm1158_vm2, %v1199_v31  ;;  %v825_v31 = vld [vmem:[%s2969_s14 + $0x10] sm:$0xff] }
 0x39f   : > { %v2410_v32 = vpop.eup %2409 }
 0x3a0   : > { %v2412_v33 = vpop.eup %2411  ;;  %v1200_v34 = vmul.f32 %v2410_v32, %v3109_v0  ;;  %v836_v0 = vld [vmem:[%s2969_s14 + $0x68] sm:$0xff] }
 0x3a1   : > { %v1201_v35 = vmul.f32 %v2412_v33, %v3111_v1  ;;  %v824_v32 = vld [vmem:[%s2969_s14 + $0x8] sm:$0xff]  ;;  %v823_v33 = vld [vmem:[%s2969_s14] sm:$0xff] }
 0x3a2   : > { %2174 = vmatmul.mubr.msk.f32.vlgmr.msra.gmra.mxu0 %vm1158_vm2, %v1200_v34  ;;  %v855_v34 = vld [vmem:[%s2971_s29 + $0x78] sm:$0xff] }
 0x3a3   : > { %v2414_v36 = vpop.eup %2413  ;;  %2176 = vmatprep.mubr.msk.f32.mxu0 %vm1158_vm2, %v1201_v35  ;;  %v854_v35 = vld [vmem:[%s2971_s29 + $0x70] sm:$0xff]  ;;  %2255 = vmatprep.subr.mxu1 %v855_v34 }
 0x3a4   : > { %v1202_v37 = vmul.f32 %v2414_v36, %v3117_v4  ;;  %v853_v36 = vld [vmem:[%s2971_s29 + $0x68] sm:$0xff] }
 0x3a6   : > { %2177 = vmatmul.mubr.msk.f32.gmra.mxu0 %vm1158_vm2, %v1202_v37  ;;  %v852_v37 = vld [vmem:[%s2971_s29 + $0x60] sm:$0xff] }
 0x462   : > { %v2175_v45 = vpop.f32.mrf.mxu0 }
 0x464   : > { %v1281_v46 = vpop.f32.mrf.mxu0 }
 0x465   : > { %2211 = vmatprep.mubr.f32.mxu1 %v1281_v46  ;;  %v848_v46 = vld [vmem:[%s2971_s29 + $0x40] sm:$0xff] }
 0x466   : > { %v2178_v47 = vpop.f32.mrf.mxu0  ;;  %2212 = vmatmul.mubr.f32.vlgmr.msra.gmra.mxu1 %v2175_v45  ;;  %v849_v45 = vld [vmem:[%s2971_s29 + $0x48] sm:$0xff] }
 0x467   : > { %2256 = vmatpush3.msra.mxu1 %v855_v34 }
 0x468   : > { %v1291_v48 = vpop.f32.mrf.mxu0  ;;  %2257 = vmatprep.subr.mxu1 %v854_v35 }
 0x469   : > { %2214 = vmatprep.mubr.f32.mxu1 %v1291_v48  ;;  %2258 = vmatpush3.msra.mxu1 %v854_v35  ;;  %v846_v48 = vld [vmem:[%s2971_s29 + $0x30] sm:$0xff] }
 0x46a   : > { %2215 = vmatmul.mubr.f32.gmra.mxu1 %v2178_v47  ;;  %2259 = vmatprep.subr.mxu1 %v853_v36  ;;  %v847_v47 = vld [vmem:[%s2971_s29 + $0x38] sm:$0xff] }
 0x46b   : > { %2260 = vmatpush3.msra.mxu1 %v853_v36 }
 0x46c   : > { %2261 = vmatprep.subr.mxu1 %v852_v37 }
 0x46d   : > { %2262 = vmatpush3.msra.mxu1 %v852_v37 }
 0x46e   : > { %2263 = vmatprep.subr.mxu1 %v851_v41 }
 0x46f   : > { %2264 = vmatpush3.msra.mxu1 %v851_v41 }
 0x470   : > { %2265 = vmatprep.subr.mxu1 %v850_v43 }
 0x471   : > { %2266 = vmatpush3.msra.mxu1 %v850_v43 }
 0x472   : > { %2267 = vmatprep.subr.mxu1 %v849_v45 }
 0x473   : > { %2268 = vmatpush3.msra.mxu1 %v849_v45 }
 0x474   : > { %2269 = vmatprep.subr.mxu1 %v848_v46 }
 0x475   : > { %2270 = vmatpush3.msra.mxu1 %v848_v46 }
 0x476   : > { %2271 = vmatprep.subr.mxu1 %v847_v47 }
 0x477   : > { %2272 = vmatpush3.msra.mxu1 %v847_v47 }
 0x478   : > { %2273 = vmatprep.subr.mxu1 %v846_v48 }
 0x479   : > { %2274 = vmatpush3.msra.mxu1 %v846_v48 }
 0x526   : > { %v2213_v50 = vpop.f32.mrf.mxu1 }
 0x527   : > { %v1378_v51 = vadd.f32 %v2213_v50, %v2002_v49  ;;  %v844_v50 = vld [vmem:[%s2971_s29 + $0x20] sm:$0xff] }
 0x528   : > { %v1372_v52 = vpop.f32.mrf.mxu1 }
 0x529   : > { %v1373_v53 = vadd.f32 %v2002_v49, %v1372_v52  ;;  %v1392_v54 = vadd.f32 %v1378_v51, %v3048_v38 }
 0x52a   : > { %v2216_v55 = vpop.f32.mrf.mxu1 }
 0x52b   : > { %v1388_v56 = vadd.f32 %v2216_v55, %v2002_v49  ;;  %v1396_v57 = vsel %vm861_vm5, %v1392_v54, 0.0  ;;  %v1391_v58 = vadd.f32 %v1373_v53, %v3024_v18  ;;  %v838_v18 = vld [vmem:[%s2969_s14 + $0x78] sm:$0xff] }
 0x52c   : > { %1401 = vadd.xlane.f32.xlu1 %v1396_v57  ;;  %v1382_v59 = vpop.f32.mrf.mxu1  ;;  %2217 = vmatprep.subr.mxu0 %v838_v18 }
 0x52d   : > { %v1383_v60 = vadd.f32 %v2002_v49, %v1382_v59  ;;  %v1395_v61 = vsel %vm861_vm5, %v1391_v58, 0.0  ;;  %v1394_v42 = vadd.f32 %v1388_v56, %v3056_v40  ;;  %2218 = vmatpush3.msra.mxu0 %v838_v18  ;;  %v845_v49 = vld [vmem:[%s2971_s29 + $0x28] sm:$0xff] }
 0x52e   : > { %1399 = vadd.xlane.f32.xlu0 %v1395_v61  ;;  %2219 = vmatprep.subr.mxu0 %v837_v63 }
 0x52f   : > { %v1398_v38 = vsel %vm861_vm5, %v1394_v42, 0.0  ;;  %v1393_v44 = vadd.f32 %v1383_v60, %v3052_v39  ;;  %2220 = vmatpush3.msra.mxu0 %v837_v63  ;;  %2275 = vmatprep.subr.mxu1 %v845_v49 }
 0x530   : > { %1405 = vadd.xlane.f32.xlu1 %v1398_v38  ;;  %2221 = vmatprep.subr.mxu0 %v836_v0 }
 0x531   : > { %v1397_v62 = vsel %vm861_vm5, %v1393_v44, 0.0  ;;  %2222 = vmatpush3.msra.mxu0 %v836_v0  ;;  %2276 = vmatpush3.msra.mxu1 %v845_v49 }
 0x532   : > { %1403 = vadd.xlane.f32.xlu0 %v1397_v62  ;;  %2223 = vmatprep.subr.mxu0 %v835_v20  ;;  %v2003_v62 = vld [vmem:[%s722_s11] ss:$0 sm:$0xff] }
 0x533   : > { %2224 = vmatpush3.msra.mxu0 %v835_v20  ;;  %2277 = vmatprep.subr.mxu1 %v844_v50 }
 0x534   : > { %2225 = vmatprep.subr.mxu0 %v834_v22  ;;  %2278 = vmatpush3.msra.mxu1 %v844_v50 }
 0x535   : > { %2226 = vmatpush3.msra.mxu0 %v834_v22 }
 0x536   : > { %2227 = vmatprep.subr.mxu0 %v833_v23 }
 0x537   : > { %2228 = vmatpush3.msra.mxu0 %v833_v23 }
 0x538   : > { %2229 = vmatprep.subr.mxu0 %v832_v24 }
 0x539   : > { %2230 = vmatpush3.msra.mxu0 %v832_v24 }
 0x53a   : > { %2231 = vmatprep.subr.mxu0 %v831_v25 }
 0x53b   : > { %2232 = vmatpush3.msra.mxu0 %v831_v25 }
 0x53c   : > { %2233 = vmatprep.subr.mxu0 %v830_v26 }
 0x53d   : > { %2234 = vmatpush3.msra.mxu0 %v830_v26 }
 0x53e   : > { %2235 = vmatprep.subr.mxu0 %v829_v27 }
 0x53f   : > { %2236 = vmatpush3.msra.mxu0 %v829_v27 }
 0x540   : > { %2237 = vmatprep.subr.mxu0 %v828_v28 }
 0x541   : > { %2238 = vmatpush3.msra.mxu0 %v828_v28 }
 0x542   : > { %2239 = vmatprep.subr.mxu0 %v827_v29 }
 0x543   : > { %2240 = vmatpush3.msra.mxu0 %v827_v29 }
 0x544   : > { %2241 = vmatprep.subr.mxu0 %v826_v30 }
 0x545   : > { %2242 = vmatpush3.msra.mxu0 %v826_v30  ;;  %v2006_v30 = vld [vmem:[%s731_s25] ss:$0 sm:$0xff] }
 0x546   : > { %2243 = vmatprep.subr.mxu0 %v825_v31 }
 0x547   : > { %2244 = vmatpush3.msra.mxu0 %v825_v31 }
 0x548   : > { %2245 = vmatprep.subr.mxu0 %v824_v32 }
 0x549   : > { %2246 = vmatpush3.msra.mxu0 %v824_v32 }
 0x54a   : > { %2247 = vmatprep.subr.mxu0 %v823_v33 }
 0x54b   : > { %2248 = vmatpush3.msra.mxu0 %v823_v33 }
 0x5b5   : > { %v1402_v40 = vpop.xlane.xlu1 %1401 }
 0x5b6   : > { %v1408_v1 = vmul.f32 0.03125, %v1402_v40 }
 0x5b7   : > { %v1400_v2 = vpop.xlane.xlu0 %1399 }
 0x5b8   : > { %v1412_v3 = vsub.f32 %v1392_v54, %v1408_v1  ;;  %v1407_v4 = vmul.f32 0.03125, %v1400_v2  ;;  %v2004_v1 = vld [vmem:[%s725_s10] ss:$0 sm:$0xff] }
 0x5b9   : > { %v1406_v39 = vpop.xlane.xlu1 %1405 }
 0x5ba   : > { %v1411_v5 = vsub.f32 %v1391_v58, %v1407_v4  ;;  %v1410_v6 = vmul.f32 0.03125, %v1406_v39  ;;  %v3168_v7 = vsel %vm861_vm5, %v1412_v3, 0.0 }
 0x5bb   : > { %v1404_v8 = vpop.xlane.xlu0 %1403  ;;  %v1420_v9 = vmul.f32 %v3168_v7, %v3168_v7 }
 0x5bc   : > { %v1414_v10 = vsub.f32 %v1394_v42, %v1410_v6  ;;  %v1409_v11 = vmul.f32 0.03125, %v1404_v8  ;;  %v3174_v12 = vsel %vm861_vm5, %v1411_v5, 0.0 }
 0x5bd   : > { %1425 = vadd.xlane.f32.xlu1 %v1420_v9  ;;  %v1419_v13 = vmul.f32 %v3174_v12, %v3174_v12 }
 0x5be   : > { %v1413_v14 = vsub.f32 %v1393_v44, %v1409_v11  ;;  %v3180_v15 = vsel %vm861_vm5, %v1414_v10, 0.0  ;;  %v843_v11 = vld [vmem:[%s2971_s29 + $0x18] sm:$0xff] }
 0x5bf   : > { %1423 = vadd.xlane.f32.xlu0 %v1419_v13  ;;  %v1422_v16 = vmul.f32 %v3180_v15, %v3180_v15  ;;  %2279 = vmatprep.subr.mxu1 %v843_v11  ;;  %v841_v13 = vld [vmem:[%s2971_s29 + $0x8] sm:$0xff] }
 0x5c0   : > { %v3186_v17 = vsel %vm861_vm5, %v1413_v14, 0.0  ;;  %2280 = vmatpush3.msra.mxu1 %v843_v11  ;;  %v840_v14 = vld [vmem:[%s2971_s29] sm:$0xff] }
 0x5c1   : > { %1429 = vadd.xlane.f32.xlu1 %v1422_v16  ;;  %v1421_v19 = vmul.f32 %v3186_v17, %v3186_v17 }
 0x5c3   : > { %1427 = vadd.xlane.f32.xlu0 %v1421_v19 }
 0x646   : > { %v1426_v51 = vpop.xlane.xlu1 %1425 }
 0x647   : > { %v1432_v52 = vmul.f32 0.03125, %v1426_v51 }
 0x648   : > { %v1424_v53 = vpop.xlane.xlu0 %1423 }
 0x649   : > { %v1436_v54 = vadd.f32 1e-05, %v1432_v52  ;;  %v1431_v55 = vmul.f32 0.03125, %v1424_v53 }
 0x64a   : > { %v1430_v56 = vpop.xlane.xlu1 %1429 }
 0x64b   : > { %2415 = vrsqrt.f32 %v1436_v54  ;;  %v1435_v57 = vadd.f32 1e-05, %v1431_v55  ;;  %v1434_v58 = vmul.f32 0.03125, %v1430_v56 }
 0x64c   : > { %v1428_v59 = vpop.xlane.xlu0 %1427 }
 0x64d   : > { %2417 = vrsqrt.f32 %v1435_v57  ;;  %v1438_v60 = vadd.f32 1e-05, %v1434_v58  ;;  %v1433_v61 = vmul.f32 0.03125, %v1428_v59 }
 0x64f   : > { %2419 = vrsqrt.f32 %v1438_v60  ;;  %v1437_v42 = vadd.f32 1e-05, %v1433_v61 }
 0x651   : > { %2421 = vrsqrt.f32 %v1437_v42 }
 0x658   : > { %v2416_v38 = vpop.eup %2415 }
 0x659   : > { %v1444_v44 = vmul.f32 %v2416_v38, %v3168_v7 }
 0x65a   : > { %v2418_v18 = vpop.eup %2417 }
 0x65b   : > { %v1443_v63 = vmul.f32 %v2418_v18, %v3174_v12  ;;  %v1454_v40 = vmul.f32 %v2003_v62, %v1444_v44  ;;  %v842_v12 = vld [vmem:[%s2971_s29 + $0x10] sm:$0xff] }
 0x65c   : > { %v2420_v0 = vpop.eup %2419  ;;  %2281 = vmatprep.subr.mxu1 %v842_v12 }
 0x65d   : > { %v1453_v2 = vmul.f32 %v2003_v62, %v1443_v63  ;;  %v1446_v3 = vmul.f32 %v2420_v0, %v3180_v15  ;;  %v1464_v6 = vadd.f32 %v2004_v1, %v1454_v40  ;;  %2282 = vmatpush3.msra.mxu1 %v842_v12  ;;  %v2005_v15 = vld [vmem:[%s728_s19] ss:$0 sm:$0xff] }
 0x65e   : > { %v2422_v4 = vpop.eup %2421  ;;  %2283 = vmatprep.subr.mxu1 %v841_v13 }
 0x65f   : > { %v1463_v39 = vadd.f32 %v2004_v1, %v1453_v2  ;;  %v1445_v5 = vmul.f32 %v2422_v4, %v3186_v17  ;;  %v1456_v7 = vmul.f32 %v2003_v62, %v1446_v3  ;;  %2284 = vmatpush3.msra.mxu1 %v841_v13 }
 0x660   : > { %2285 = vmatprep.subr.mxu1 %v840_v14 }
 0x661   : > { %2249 = vmatprep.mubr.f32.mxu0 %v1463_v39  ;;  %v1455_v8 = vmul.f32 %v2003_v62, %v1445_v5  ;;  %v1466_v10 = vadd.f32 %v2004_v1, %v1456_v7  ;;  %2286 = vmatpush3.msra.mxu1 %v840_v14  ;;  %v2007_v14 = vld [vmem:[%s734_s30] ss:$0 sm:$0xff] }
 0x662   : > { %2250 = vmatmul.mubr.f32.vlgmr.msra.gmra.mxu0 %v1464_v6 }
 0x663   : > { %v1465_v9 = vadd.f32 %v2004_v1, %v1455_v8 }
 0x665   : > { %2252 = vmatprep.mubr.f32.mxu0 %v1465_v9 }
 0x666   : > { %2253 = vmatmul.mubr.f32.gmra.mxu0 %v1466_v10 }
 0x722   : > { %v2251_v16 = vpop.f32.mrf.mxu0 }
 0x723   : > { %v1545_v17 = vadd.f32 %v2251_v16, %v2005_v15 }
 0x724   : > { %v1539_v19 = vpop.f32.mrf.mxu0 }
 0x725   : > { %v1540_v20 = vadd.f32 %v2005_v15, %v1539_v19  ;;  %v1559_v24 = vmax.f32 %v1545_v17, 0.0  ;;  %v2008_v17 = vld [vmem:[%s737_s12] ss:$0 sm:$0xff] }
 0x726   : > { %v2254_v22 = vpop.f32.mrf.mxu0 }
 0x727   : > { %v1558_v23 = vmax.f32 %v1540_v20, 0.0  ;;  %v1555_v25 = vadd.f32 %v2254_v22, %v2005_v15 }
 0x728   : > { %v1549_v26 = vpop.f32.mrf.mxu0 }
 0x729   : > { %v1550_v27 = vadd.f32 %v2005_v15, %v1549_v26  ;;  %2287 = vmatprep.mubr.f32.mxu1 %v1558_v23  ;;  %v1561_v29 = vmax.f32 %v1555_v25, 0.0 }
 0x72a   : > { %2288 = vmatmul.mubr.f32.vlgmr.msra.gmra.mxu1 %v1559_v24 }
 0x72b   : > { %v1560_v28 = vmax.f32 %v1550_v27, 0.0 }
 0x72d   : > { %2290 = vmatprep.mubr.f32.mxu1 %v1560_v28 }
 0x72e   : > { %2291 = vmatmul.mubr.f32.gmra.mxu1 %v1561_v29 }
 0x7ea   : > { %v2289_v31 = vpop.f32.mrf.mxu1 }
 0x7eb   : > { %v1640_v32 = vadd.f32 %v2289_v31, %v2006_v30 }
 0x7ec   : > { %v1634_v33 = vpop.f32.mrf.mxu1 }
 0x7ed   : > { %v1635_v34 = vadd.f32 %v2006_v30, %v1634_v33  ;;  %v1654_v35 = vadd.f32 %v1640_v32, %v1464_v6 }
 0x7ee   : > { %v2292_v36 = vpop.f32.mrf.mxu1 }
 0x7ef   : > { %v1650_v37 = vadd.f32 %v2292_v36, %v2006_v30  ;;  %v1658_v41 = vsel %vm861_vm5, %v1654_v35, 0.0  ;;  %v1653_v43 = vadd.f32 %v1635_v34, %v1463_v39 }
 0x7f0   : > { %1663 = vadd.xlane.f32.xlu1 %v1658_v41  ;;  %v1644_v45 = vpop.f32.mrf.mxu1 }
 0x7f1   : > { %v1645_v46 = vadd.f32 %v2006_v30, %v1644_v45  ;;  %v1657_v47 = vsel %vm861_vm5, %v1653_v43, 0.0  ;;  %v1656_v48 = vadd.f32 %v1650_v37, %v1466_v10 }
 0x7f2   : > { %1661 = vadd.xlane.f32.xlu0 %v1657_v47 }
 0x7f3   : > { %v1660_v49 = vsel %vm861_vm5, %v1656_v48, 0.0  ;;  %v1655_v50 = vadd.f32 %v1645_v46, %v1465_v9 }
 0x7f4   : > { %1667 = vadd.xlane.f32.xlu1 %v1660_v49 }
 0x7f5   : > { %v1659_v51 = vsel %vm861_vm5, %v1655_v50, 0.0 }
 0x7f6   : > { %1665 = vadd.xlane.f32.xlu0 %v1659_v51 }
 0x879   : > { %v1664_v52 = vpop.xlane.xlu1 %1663 }
 0x87a   : > { %v1670_v53 = vmul.f32 0.03125, %v1664_v52 }
 0x87b   : > { %v1662_v54 = vpop.xlane.xlu0 %1661 }
 0x87c   : > { %v1674_v55 = vsub.f32 %v1654_v35, %v1670_v53  ;;  %v1669_v56 = vmul.f32 0.03125, %v1662_v54 }
 0x87d   : > { %v1668_v57 = vpop.xlane.xlu1 %1667 }
 0x87e   : > { %v1673_v58 = vsub.f32 %v1653_v43, %v1669_v56  ;;  %v1672_v59 = vmul.f32 0.03125, %v1668_v57  ;;  %v1678_v60 = vsel %vm861_vm5, %v1674_v55, 0.0 }
 0x87f   : > { %v1666_v61 = vpop.xlane.xlu0 %1665  ;;  %v1682_v42 = vmul.f32 %v1678_v60, %v1678_v60 }
 0x880   : > { %v1676_v38 = vsub.f32 %v1656_v48, %v1672_v59  ;;  %v1671_v44 = vmul.f32 0.03125, %v1666_v61  ;;  %v1677_v62 = vsel %vm861_vm5, %v1673_v58, 0.0 }
 0x881   : > { %1687 = vadd.xlane.f32.xlu1 %v1682_v42  ;;  %v1681_v18 = vmul.f32 %v1677_v62, %v1677_v62 }
 0x882   : > { %v1675_v63 = vsub.f32 %v1655_v50, %v1671_v44  ;;  %v1680_v0 = vsel %vm861_vm5, %v1676_v38, 0.0 }
 0x883   : > { %1685 = vadd.xlane.f32.xlu0 %v1681_v18  ;;  %v1684_v40 = vmul.f32 %v1680_v0, %v1680_v0 }
 0x884   : > { %v1679_v1 = vsel %vm861_vm5, %v1675_v63, 0.0 }
 0x885   : > { %1691 = vadd.xlane.f32.xlu1 %v1684_v40  ;;  %v1683_v2 = vmul.f32 %v1679_v1, %v1679_v1 }
 0x887   : > { %1689 = vadd.xlane.f32.xlu0 %v1683_v2 }
 0x90a   : > { %v1688_v3 = vpop.xlane.xlu1 %1687 }
 0x90b   : > { %v1694_v4 = vmul.f32 0.03125, %v1688_v3 }
 0x90c   : > { %v1686_v39 = vpop.xlane.xlu0 %1685 }
 0x90d   : > { %v1698_v5 = vadd.f32 1e-05, %v1694_v4  ;;  %v1693_v6 = vmul.f32 0.03125, %v1686_v39 }
 0x90e   : > { %v1692_v7 = vpop.xlane.xlu1 %1691 }
 0x90f   : > { %2423 = vrsqrt.f32 %v1698_v5  ;;  %v1697_v8 = vadd.f32 1e-05, %v1693_v6  ;;  %v1696_v9 = vmul.f32 0.03125, %v1692_v7 }
 0x910   : > { %v1690_v10 = vpop.xlane.xlu0 %1689 }
 0x911   : > { %2425 = vrsqrt.f32 %v1697_v8  ;;  %v1700_v11 = vadd.f32 1e-05, %v1696_v9  ;;  %v1695_v12 = vmul.f32 0.03125, %v1690_v10 }
 0x913   : > { %2427 = vrsqrt.f32 %v1700_v11  ;;  %v1699_v21 = vadd.f32 1e-05, %v1695_v12 }
 0x915   : > { %2429 = vrsqrt.f32 %v1699_v21 }
 0x91c   : > { %v2424_v13 = vpop.eup %2423 }
 0x91d   : > { %v1706_v15 = vmul.f32 %v2424_v13, %v1678_v60 }
 0x91e   : > { %v2426_v16 = vpop.eup %2425 }
 0x91f   : > { %v1716_v19 = vmul.f32 %v2007_v14, %v1706_v15  ;;  %v1705_v20 = vmul.f32 %v2426_v16, %v1677_v62 }
 0x920   : > { %v2428_v22 = vpop.eup %2427 }
 0x921   : > { %v1726_v23 = vadd.f32 %v2008_v17, %v1716_v19  ;;  %v1715_v24 = vmul.f32 %v2007_v14, %v1705_v20  ;;  %v1708_v25 = vmul.f32 %v2428_v22, %v1680_v0 }
 0x922   : > { %v2430_v26 = vpop.eup %2429 }
 0x923   : > { %1730 = vst [vmem:[#allocation2] sm:$0xff] %v1726_v23  ;;  %v1725_v27 = vadd.f32 %v2008_v17, %v1715_v24  ;;  %v1718_v28 = vmul.f32 %v2007_v14, %v1708_v25  ;;  %v1707_v29 = vmul.f32 %v2430_v26, %v1679_v1 }
 0x925   : > { %1729 = vst [vmem:[#allocation2 + $0x10] sm:$0xff] %v1725_v27  ;;  %v1728_v30 = vadd.f32 %v2008_v17, %v1718_v28  ;;  %v1717_v31 = vmul.f32 %v2007_v14, %v1707_v29  ;;  %1736 = sbr.rel (%p2009_p1) target bundleno = 2348 (0x92c), region = 104 }
 0x927   : > { %1732 = vst [vmem:[#allocation2 + $0x8] sm:$0xff] %v1728_v30  ;;  %v1727_v32 = vadd.f32 %v2008_v17, %v1717_v31 }
 0x929   : > { %1731 = vst [vmem:[#allocation2 + $0x18] sm:$0xff] %v1727_v32 }
 0x92a   : > { %1737 = vst [vmem:[#allocation14] sm:$0xff] %v1725_v27  ;;  %1738 = vst [vmem:[#allocation14 + $0x8] sm:$0xff] %v1726_v23 }
 0x92b   : > { %1739 = vst [vmem:[#allocation14 + $0x10] sm:$0xff] %v1727_v32  ;;  %1740 = vst [vmem:[#allocation14 + $0x18] sm:$0xff] %v1728_v30 }
 0x92c PF: > { %p2340_p5 = scmp.eq.s32.totalorder %s2868_s8, 1  ;;  %s2700_s27 = smov [#allocation14]  }
 0x92d   : > { %s1750_s30 = sshll.u32 %s2700_s27, 4  ;;  %s1751_s30 = int_to_ptr.vmem [resolvable:$true] %s1750_s30 }
 0x92e   : > { %s2597_s23 = scalar_lea.vmem %s1751_s30, 512  ;;  %p2604_p12 = scmp.lt.s32.totalorder %s1751_s30, %s1751_s30 }
 0x92f   : > { %p2598_p8 = scmp.ne.s32.totalorder %s1751_s30, %s2597_s23  ;;  %p2605_p11 = scmp.lt.s32.totalorder %s2597_s23, %s2597_s23 }
 0x931   : > { %p2599_p9 = pnand %p2598_p8, %p2340_p5  ;;  %p2606_p3 = por %p2605_p11, %p2604_p12 }
 0x933   : > { %p2600_p10 = pneg %p2599_p9 }
 0x935   : > { %p2607_p13 = pnand %p2606_p3, %p2600_p10 }
 0x937   : > { %2610 = shalt.err (!%p2607_p13)
}
 0x938   : > { %s2701_s28 = smov 128   ;;  %s2702_s22 = smov 8  }
 0x939   : > { %s3370_s12 = sld [smem:[#allocation37_spill]] }
 0x93f   : > { %2314 = dma.vmem_to_hbm [thread:$0]  (%p2340_p5), %s1751_s30, 512, %s3370_s12, [#allocation5], %s2701_s28, %s2701_s28, %s2702_s22  }
 0x940   : > { %2662 = dma.done.wait (%p2340_p5), [#allocation5], 512  }
 0x941   : > { %2664 = vsyncadd (%p2340_p5), [#allocation5], 4294966784 }
 0x942 PF: > { %s3371_s0 = sld [smem:[#allocation23_spill]] }
 0x943   : > { %s3372_s25 = sld [smem:[#allocation20_spill]] }
 0x944   : > { %s3373_s26 = sld [smem:[#allocation21_spill]] }
 0x945   : > { %s3374_s27 = sld [smem:[#allocation25_spill]] }
 0x946   : > { %s3375_s28 = sld [smem:[#allocation22_spill]] }
 0x947   : > { %s3376_s29 = sld [smem:[#allocation24_spill]] }
 0x948   : > { %s34_s30 = sadd.s32 1, %s3371_s0  }
 0x949   : > { %p31_p2 = scmp.ge.s32.totalorder %s34_s30, 4  }
 0x94b   :  { %33 = sbr.rel (!%p31_p2) target bundleno = 23 (0x17), region = 193 }
 0x950   :  { %1766 = vsyncpa [#allocation4], 1 }
 0x951   :  { %1768 = vsyncpa [#allocation4 + $0x1], 1 }
 0x952   :  { %1769 = vsyncpa [#allocation7], 1 }
 0x953   :  { %1771 = vsyncpa [#allocation7 + $0x1], 1 }
 0x954   :  { %1772 = vsyncpa [#allocation10], 1 }
 0x955   :  { %1774 = vsyncpa [#allocation10 + $0x1], 1 }
 0x956   :  { %1775 = vsyncpa [#allocation13], 1 }
 0x957   :  { %1777 = vsyncpa [#allocation13 + $0x1], 1 }
 0x958   :  { %1778 = vsyncpa [#allocation5], 1 }
 0x959   :  { %1780 = vsyncpa [#allocation5 + $0x1], 1 }

</bundles_post_ra>
